<compile_context>
chip_gen: v5e
topology: v5e:2x2
jax: 0.10.0
libtpu: 0.0.40
codegen_flags: <defaults>
</compile_context>

<pallas_src>
import math

import jax
import jax.numpy as jnp
from jax.experimental import pallas as pl
from jax.experimental.pallas import tpu as pltpu


# ---------------------------------------------------------------------------
# Pallas kernel
# ---------------------------------------------------------------------------
def _make_attn_block_kernel(num_heads: int, head_dim: int, eps: float = 1e-5):
    scale = head_dim ** (-0.5)

    def kernel(x_ref,
               n1_w, n1_b,
               qkv_w, proj_w, proj_b,
               n2_w, n2_b,
               f1_w, f1_b, f2_w, f2_b,
               o_ref):
        Bt, N, C = x_ref.shape
        R = Bt * N
        # Collapse leading dims (lane dim unchanged -> cheap): all row-wise ops
        # (LN, QKV, proj, MLP) run on the whole (R, C) slab in one GEMM each.
        x = x_ref[...].astype(jnp.float32).reshape(R, C)

        def layer_norm(t, w_ref, b_ref):
            mu = jnp.mean(t, axis=-1, keepdims=True)
            var = jnp.mean(jnp.square(t - mu), axis=-1, keepdims=True)
            return (t - mu) * jax.lax.rsqrt(var + eps) * w_ref[...] + b_ref[...]

        def mxu(a, w_ref_val):
            # Activations cast to bf16; weights arrive already bf16.
            # f32 accumulation on the MXU.
            return jnp.dot(a.astype(jnp.bfloat16), w_ref_val,
                           preferred_element_type=jnp.float32)

        # ------------------ attention branch -------------------------------
        xn = layer_norm(x, n1_w, n1_b)                        # (R, C) f32
        qkv = mxu(xn, qkv_w[...])                             # (R, 3C) one fused GEMM
        # Fused-QKV column layout matches torch: [3 (q,k,v), H, hd].
        q = (qkv[:, 0 * C:1 * C] * scale).reshape(Bt, N, C)   # fold scale into q
        k = qkv[:, 1 * C:2 * C].reshape(Bt, N, C)
        v = qkv[:, 2 * C:3 * C].reshape(Bt, N, C)
        q = q.astype(jnp.bfloat16)
        k = k.astype(jnp.bfloat16)
        v = v.astype(jnp.bfloat16)

        # Per-head logits/softmax/PV: batched over the batch dim on the MXU,
        # static loop over heads only (H is small).  Contraction K = head_dim
        # is the inherent small-K regime of attention.
        per_head = []
        for h in range(num_heads):
            lo = h * head_dim
            qh = q[..., lo:lo + head_dim]                     # (Bt, N, hd)
            kh = k[..., lo:lo + head_dim]
            vh = v[..., lo:lo + head_dim]
            logits = jnp.einsum('bnd,bsd->bns', qh, kh,
                                preferred_element_type=jnp.float32)  # (Bt,N,N)
            m = jnp.max(logits, axis=-1, keepdims=True)
            e = jnp.exp(logits - m)
            p = e * pl.reciprocal(jnp.sum(e, axis=-1, keepdims=True),
                                  approx=True)
            per_head.append(
                jnp.einsum('bns,bsd->bnd', p.astype(jnp.bfloat16), vh,
                           preferred_element_type=jnp.float32))      # (Bt,N,hd)
        attn_out = jnp.concatenate(per_head, axis=-1).reshape(R, C)  # (R, C)
        # Single fused full-C output projection on the concatenated heads.
        x = x + mxu(attn_out, proj_w[...]) + proj_b[...]

        # ------------------ MLP branch --------------------------------------
        xn2 = layer_norm(x, n2_w, n2_b)
        h1 = mxu(xn2, f1_w[...]) + f1_b[...]                  # (R, 4C) f32
        # exact (erf) GELU in f32, matching torch.nn.GELU default
        h1 = 0.5 * h1 * (1.0 + jax.lax.erf(h1 * (1.0 / math.sqrt(2.0))))
        x = x + mxu(h1, f2_w[...]) + f2_b[...]

        o_ref[...] = x.reshape(Bt, N, C).astype(o_ref.dtype)

    return kernel


# ---------------------------------------------------------------------------
# Wrapper
# ---------------------------------------------------------------------------
def _pick_batch_block(B: int, N: int) -> int:
    """>=2 grid steps when possible; keep R = batch_block*N around 256-512."""
    rows_target = 512
    bb = max(1, rows_target // max(N, 1))
    bb = min(bb, B)
    if B > 1:
        bb = min(bb, B // 2)          # at least 2 steps: pipelining + megacore
    bb = max(bb, 1)
    while B % bb:                      # round down to a divisor of B
        bb -= 1
    return bb


def _pick_vmem_limit() -> int:
    cap = 128 * 1024 * 1024
    try:
        cap = int(pltpu.get_tpu_info().vmem_capacity_bytes)
    except Exception:
        pass
    # Leave headroom: ~48 MiB on v7x (64 MiB VMEM), ~96 MiB on v5e/v6e (128 MiB).
    return min(96 * 1024 * 1024, (cap * 3) // 4)


def attn_block(x, params, *, num_heads, batch_block=None):
    """x: (B, N, C). Returns (B, N, C)."""
    B, N, C = x.shape
    head_dim = C // num_heads
    if batch_block is None:
        batch_block = _pick_batch_block(B, N)
    assert B % batch_block == 0
    grid = (B // batch_block,)

    row = lambda v: v.reshape(1, -1)                  # LN params / biases: f32
    bf16 = lambda v: v.astype(jnp.bfloat16)           # matmul weights: bf16
    # All weights lane-dense 2D, (in, out) layout (y = x @ W + b).
    weights = [
        row(params["norm1_w"]), row(params["norm1_b"]),
        bf16(params["qkv_w"]),                             # (C, 3C) bf16
        bf16(params["proj_w"]), row(params["proj_b"]),     # (C, C) bf16, (1, C)
        row(params["norm2_w"]), row(params["norm2_b"]),
        bf16(params["fc1_w"]), row(params["fc1_b"]),       # (C, 4C) bf16, (1, 4C)
        bf16(params["fc2_w"]), row(params["fc2_b"]),       # (4C, C) bf16, (1, C)
    ]

    kernel = _make_attn_block_kernel(num_heads, head_dim)
    vmem_limit = _pick_vmem_limit()

    def weight_spec(w, single_buffer):
        nd = w.ndim
        idx = lambda i, nd=nd: (0,) * nd
        if single_buffer:
            # Grid-constant weights: single-buffer to halve weight VMEM.
            return pl.BlockSpec(w.shape, idx, pipeline_mode=pl.Buffered(1))
        return pl.BlockSpec(w.shape, idx)

    def build(single_buffer_weights):
        in_specs = [pl.BlockSpec((batch_block, N, C), lambda i: (i, 0, 0))]
        in_specs += [weight_spec(w, single_buffer_weights) for w in weights]
        return pl.pallas_call(
            kernel,
            out_shape=jax.ShapeDtypeStruct((B, N, C), x.dtype),
            grid=grid,
            in_specs=in_specs,
            out_specs=pl.BlockSpec((batch_block, N, C), lambda i: (i, 0, 0)),
            compiler_params=pltpu.CompilerParams(
                dimension_semantics=("parallel",),
                vmem_limit_bytes=vmem_limit,
            ),
        )

    try:
        return build(True)(x, *weights)
    except Exception:
        # pl.Buffered(1) on grid-constant inputs not supported by this
        # jax/Mosaic version -> fall back to default double-buffering.
        return build(False)(x, *weights)


# ---------------------------------------------------------------------------
# Pure-JAX reference (mirrors the PyTorch AttnBlock forward, f32 throughout)
# ---------------------------------------------------------------------------
def _ln_ref(x, w, b, eps=1e-5):
    mu = x.mean(-1, keepdims=True)
    var = ((x - mu) ** 2).mean(-1, keepdims=True)
    return (x - mu) / jnp.sqrt(var + eps) * w + b


def _attn_ref(x, qkv_w, proj_w, proj_b, num_heads):
    B, N, C = x.shape
    hd = C // num_heads
    scale = hd ** (-0.5)
    qkv = (x @ qkv_w).reshape(B, N, 3, num_heads, hd).transpose(2, 0, 3, 1, 4)
    q, k, v = qkv[0], qkv[1], qkv[2]
    a = jnp.einsum("bhnc,bhsc->bhns", q, k) * scale
    a = jax.nn.softmax(a, axis=-1)
    o = jnp.einsum("bhns,bhsc->bhnc", a, v)
    o = o.transpose(0, 2, 1, 3).reshape(B, N, C)
    return o @ proj_w + proj_b


def _block_ref(x, p, num_heads):
    x = x + _attn_ref(_ln_ref(x, p["norm1_w"], p["norm1_b"]),
                      p["qkv_w"], p["proj_w"], p["proj_b"], num_heads)
    m = _ln_ref(x, p["norm2_w"], p["norm2_b"])
    m = jax.nn.gelu(m @ p["fc1_w"] + p["fc1_b"], approximate=False)
    x = x + (m @ p["fc2_w"] + p["fc2_b"])
    return x


# ---------------------------------------------------------------------------
# Main
# ---------------------------------------------------------------------------
if __name__ == "__main__":
    B, N, C = 2, 16, 32
    NUM_HEADS = 4
    MLP_HIDDEN = int(C * 4.0)

    root = jax.random.PRNGKey(0)
    ks = jax.random.split(root, 12)
    wscale = 0.05

    params = {
        "norm1_w": 1.0 + 0.1 * jax.random.normal(ks[0], (C,), jnp.float32),
        "norm1_b": 0.1 * jax.random.normal(ks[1], (C,), jnp.float32),
        "norm2_w": 1.0 + 0.1 * jax.random.normal(ks[2], (C,), jnp.float32),
        "norm2_b": 0.1 * jax.random.normal(ks[3], (C,), jnp.float32),
        # fused qkv, qkv_bias=False (no bias)
        "qkv_w": wscale * jax.random.normal(ks[4], (C, 3 * C), jnp.float32),
        "proj_w": wscale * jax.random.normal(ks[5], (C, C), jnp.float32),
        "proj_b": wscale * jax.random.normal(ks[6], (C,), jnp.float32),
        "fc1_w": wscale * jax.random.normal(ks[7], (C, MLP_HIDDEN), jnp.float32),
        "fc1_b": wscale * jax.random.normal(ks[8], (MLP_HIDDEN,), jnp.float32),
        "fc2_w": wscale * jax.random.normal(ks[9], (MLP_HIDDEN, C), jnp.float32),
        "fc2_b": wscale * jax.random.normal(ks[10], (C,), jnp.float32),
    }

    x = jax.random.normal(ks[11], (B, N, C), jnp.float32)

    out = attn_block(x, params, num_heads=NUM_HEADS)
    out = jax.block_until_ready(out)

    ref = _block_ref(x, params, NUM_HEADS)
    assert out.shape == (B, N, C)
    err = float(jnp.max(jnp.abs(out - ref)))
    # bf16 MXU operands + approx reciprocal -> slightly looser tolerance vs f32 ref
    assert err < 1e-2, err

    print("KERNEL_OK")
</pallas_src>

<mosaic_0001>
module attributes {stable_mosaic.version = 11 : i64} {
  func.func @kernel(%arg0: i32, %arg1: memref<1x16x32xf32, #tpu.memory_space<vmem>>, %arg2: memref<1x32xf32, #tpu.memory_space<vmem>>, %arg3: memref<1x32xf32, #tpu.memory_space<vmem>>, %arg4: memref<32x96xbf16, #tpu.memory_space<vmem>>, %arg5: memref<32x32xbf16, #tpu.memory_space<vmem>>, %arg6: memref<1x32xf32, #tpu.memory_space<vmem>>, %arg7: memref<1x32xf32, #tpu.memory_space<vmem>>, %arg8: memref<1x32xf32, #tpu.memory_space<vmem>>, %arg9: memref<32x128xbf16, #tpu.memory_space<vmem>>, %arg10: memref<1x128xf32, #tpu.memory_space<vmem>>, %arg11: memref<128x32xbf16, #tpu.memory_space<vmem>>, %arg12: memref<1x32xf32, #tpu.memory_space<vmem>>, %arg13: memref<1x16x32xf32, #tpu.memory_space<vmem>>) attributes {dimension_semantics = [#tpu.dimension_semantics<parallel>], iteration_bounds = array<i64: 2>, scalar_prefetch = 0 : i64, scratch_operands = 0 : i64, tpu.core_type = #tpu.core_type<tc>, window_params = [{transform_indices = @transform_0, window_bounds = array<i64: 1, 16, 32>}, {pipeline_mode = #tpu.pipeline_mode<synchronous>, transform_indices = @transform_1, window_bounds = array<i64: 1, 32>}, {pipeline_mode = #tpu.pipeline_mode<synchronous>, transform_indices = @transform_2, window_bounds = array<i64: 1, 32>}, {pipeline_mode = #tpu.pipeline_mode<synchronous>, transform_indices = @transform_3, window_bounds = array<i64: 32, 96>}, {pipeline_mode = #tpu.pipeline_mode<synchronous>, transform_indices = @transform_4, window_bounds = array<i64: 32, 32>}, {pipeline_mode = #tpu.pipeline_mode<synchronous>, transform_indices = @transform_5, window_bounds = array<i64: 1, 32>}, {pipeline_mode = #tpu.pipeline_mode<synchronous>, transform_indices = @transform_6, window_bounds = array<i64: 1, 32>}, {pipeline_mode = #tpu.pipeline_mode<synchronous>, transform_indices = @transform_7, window_bounds = array<i64: 1, 32>}, {pipeline_mode = #tpu.pipeline_mode<synchronous>, transform_indices = @transform_8, window_bounds = array<i64: 32, 128>}, {pipeline_mode = #tpu.pipeline_mode<synchronous>, transform_indices = @transform_9, window_bounds = array<i64: 1, 128>}, {pipeline_mode = #tpu.pipeline_mode<synchronous>, transform_indices = @transform_10, window_bounds = array<i64: 128, 32>}, {pipeline_mode = #tpu.pipeline_mode<synchronous>, transform_indices = @transform_11, window_bounds = array<i64: 1, 32>}, {transform_indices = @transform_12, window_bounds = array<i64: 1, 16, 32>}]} {
    %c0 = arith.constant 0 : index
    %c0_0 = arith.constant 0 : index
    %c0_1 = arith.constant 0 : index
    %0 = vector.load %arg1[%c0, %c0_0, %c0_1] : memref<1x16x32xf32, #tpu.memory_space<vmem>>, vector<1x16x32xf32>
    %1 = vector.shape_cast %0 : vector<1x16x32xf32> to vector<16x32xf32>
    %cst = arith.constant dense<0.000000e+00> : vector<16xf32>
    %2 = vector.multi_reduction <add>, %1, %cst [1] : vector<16x32xf32> to vector<16xf32>
    %3 = vector.shape_cast %2 : vector<16xf32> to vector<16x1xf32>
    %cst_2 = arith.constant 3.200000e+01 : f32
    %4 = vector.broadcast %cst_2 : f32 to vector<16x1xf32>
    %5 = arith.divf %3, %4 : vector<16x1xf32>
    %6 = vector.broadcast %5 : vector<16x1xf32> to vector<16x32xf32>
    %7 = arith.subf %1, %6 : vector<16x32xf32>
    %8 = arith.mulf %7, %7 : vector<16x32xf32>
    %cst_3 = arith.constant dense<0.000000e+00> : vector<16xf32>
    %9 = vector.multi_reduction <add>, %8, %cst_3 [1] : vector<16x32xf32> to vector<16xf32>
    %10 = vector.shape_cast %9 : vector<16xf32> to vector<16x1xf32>
    %cst_4 = arith.constant 3.200000e+01 : f32
    %11 = vector.broadcast %cst_4 : f32 to vector<16x1xf32>
    %12 = arith.divf %10, %11 : vector<16x1xf32>
    %13 = vector.broadcast %5 : vector<16x1xf32> to vector<16x32xf32>
    %14 = arith.subf %1, %13 : vector<16x32xf32>
    %cst_5 = arith.constant 9.99999974E-6 : f32
    %15 = vector.broadcast %cst_5 : f32 to vector<16x1xf32>
    %16 = arith.addf %12, %15 : vector<16x1xf32>
    %17 = math.rsqrt %16 : vector<16x1xf32>
    %18 = vector.broadcast %17 : vector<16x1xf32> to vector<16x32xf32>
    %19 = arith.mulf %14, %18 : vector<16x32xf32>
    %c0_6 = arith.constant 0 : index
    %c0_7 = arith.constant 0 : index
    %20 = vector.load %arg2[%c0_6, %c0_7] : memref<1x32xf32, #tpu.memory_space<vmem>>, vector<1x32xf32>
    %21 = vector.broadcast %20 : vector<1x32xf32> to vector<16x32xf32>
    %22 = arith.mulf %19, %21 : vector<16x32xf32>
    %c0_8 = arith.constant 0 : index
    %c0_9 = arith.constant 0 : index
    %23 = vector.load %arg3[%c0_8, %c0_9] : memref<1x32xf32, #tpu.memory_space<vmem>>, vector<1x32xf32>
    %24 = vector.broadcast %23 : vector<1x32xf32> to vector<16x32xf32>
    %25 = arith.addf %22, %24 : vector<16x32xf32>
    %c0_10 = arith.constant 0 : index
    %c0_11 = arith.constant 0 : index
    %26 = vector.load %arg4[%c0_10, %c0_11] : memref<32x96xbf16, #tpu.memory_space<vmem>>, vector<32x96xbf16>
    %27 = arith.truncf %25 : vector<16x32xf32> to vector<16x32xbf16>
    %cst_12 = arith.constant dense<0.000000e+00> : vector<16x96xf32>
    %28 = tpu.matmul %27, %26, %cst_12 {dimension_numbers = #tpu.dot_dimension_numbers<[1], [0], [0], [1], [0, 0, 1, 1], [], []>} : vector<16x32xbf16>, vector<32x96xbf16>, vector<16x96xf32> -> vector<16x96xf32>
    %29 = vector.extract_strided_slice %28 {offsets = [0, 0], sizes = [16, 32], strides = [1, 1]} : vector<16x96xf32> to vector<16x32xf32>
    %cst_13 = arith.constant 0.353553385 : f32
    %30 = vector.broadcast %cst_13 : f32 to vector<16x32xf32>
    %31 = arith.mulf %29, %30 : vector<16x32xf32>
    %32 = vector.shape_cast %31 : vector<16x32xf32> to vector<1x16x32xf32>
    %33 = vector.extract_strided_slice %28 {offsets = [0, 32], sizes = [16, 32], strides = [1, 1]} : vector<16x96xf32> to vector<16x32xf32>
    %34 = vector.shape_cast %33 : vector<16x32xf32> to vector<1x16x32xf32>
    %35 = vector.extract_strided_slice %28 {offsets = [0, 64], sizes = [16, 32], strides = [1, 1]} : vector<16x96xf32> to vector<16x32xf32>
    %36 = vector.shape_cast %35 : vector<16x32xf32> to vector<1x16x32xf32>
    %37 = arith.truncf %32 : vector<1x16x32xf32> to vector<1x16x32xbf16>
    %38 = arith.truncf %34 : vector<1x16x32xf32> to vector<1x16x32xbf16>
    %39 = arith.truncf %36 : vector<1x16x32xf32> to vector<1x16x32xbf16>
    %40 = vector.extract_strided_slice %37 {offsets = [0, 0, 0], sizes = [1, 16, 8], strides = [1, 1, 1]} : vector<1x16x32xbf16> to vector<1x16x8xbf16>
    %41 = vector.extract_strided_slice %38 {offsets = [0, 0, 0], sizes = [1, 16, 8], strides = [1, 1, 1]} : vector<1x16x32xbf16> to vector<1x16x8xbf16>
    %42 = vector.extract_strided_slice %39 {offsets = [0, 0, 0], sizes = [1, 16, 8], strides = [1, 1, 1]} : vector<1x16x32xbf16> to vector<1x16x8xbf16>
    "tpu.trace_start"() <{level = 10 : i32, message = "bnd,bsd->bns"}> : () -> ()
    %cst_14 = arith.constant dense<0.000000e+00> : vector<1x16x16xf32>
    %43 = tpu.matmul %40, %41, %cst_14 {dimension_numbers = #tpu.dot_dimension_numbers<[2], [2], [1], [1], [0, 0, 0, 1, 1, 1], [0], [0]>} : vector<1x16x8xbf16>, vector<1x16x8xbf16>, vector<1x16x16xf32> -> vector<1x16x16xf32>
    "tpu.trace_stop"() : () -> ()
    %cst_15 = arith.constant dense<0xFF800000> : vector<1x16xf32>
    %44 = vector.multi_reduction <maximumf>, %43, %cst_15 [2] : vector<1x16x16xf32> to vector<1x16xf32>
    %45 = vector.shape_cast %44 : vector<1x16xf32> to vector<1x16x1xf32>
    %46 = vector.broadcast %45 : vector<1x16x1xf32> to vector<1x16x16xf32>
    %47 = arith.subf %43, %46 : vector<1x16x16xf32>
    %48 = math.exp %47 : vector<1x16x16xf32>
    %cst_16 = arith.constant dense<0.000000e+00> : vector<1x16xf32>
    %49 = vector.multi_reduction <add>, %48, %cst_16 [2] : vector<1x16x16xf32> to vector<1x16xf32>
    %50 = vector.shape_cast %49 : vector<1x16xf32> to vector<1x16x1xf32>
    %51 = tpu.reciprocal %50 {approx = true} : vector<1x16x1xf32> -> vector<1x16x1xf32>
    %52 = vector.broadcast %51 : vector<1x16x1xf32> to vector<1x16x16xf32>
    %53 = arith.mulf %48, %52 : vector<1x16x16xf32>
    %54 = arith.truncf %53 : vector<1x16x16xf32> to vector<1x16x16xbf16>
    "tpu.trace_start"() <{level = 10 : i32, message = "bns,bsd->bnd"}> : () -> ()
    %cst_17 = arith.constant dense<0.000000e+00> : vector<1x16x8xf32>
    %55 = tpu.matmul %54, %42, %cst_17 {dimension_numbers = #tpu.dot_dimension_numbers<[2], [1], [1], [2], [0, 0, 0, 1, 1, 2], [0], [0]>} : vector<1x16x16xbf16>, vector<1x16x8xbf16>, vector<1x16x8xf32> -> vector<1x16x8xf32>
    "tpu.trace_stop"() : () -> ()
    %56 = vector.extract_strided_slice %37 {offsets = [0, 0, 8], sizes = [1, 16, 8], strides = [1, 1, 1]} : vector<1x16x32xbf16> to vector<1x16x8xbf16>
    %57 = vector.extract_strided_slice %38 {offsets = [0, 0, 8], sizes = [1, 16, 8], strides = [1, 1, 1]} : vector<1x16x32xbf16> to vector<1x16x8xbf16>
    %58 = vector.extract_strided_slice %39 {offsets = [0, 0, 8], sizes = [1, 16, 8], strides = [1, 1, 1]} : vector<1x16x32xbf16> to vector<1x16x8xbf16>
    "tpu.trace_start"() <{level = 10 : i32, message = "bnd,bsd->bns"}> : () -> ()
    %cst_18 = arith.constant dense<0.000000e+00> : vector<1x16x16xf32>
    %59 = tpu.matmul %56, %57, %cst_18 {dimension_numbers = #tpu.dot_dimension_numbers<[2], [2], [1], [1], [0, 0, 0, 1, 1, 1], [0], [0]>} : vector<1x16x8xbf16>, vector<1x16x8xbf16>, vector<1x16x16xf32> -> vector<1x16x16xf32>
    "tpu.trace_stop"() : () -> ()
    %cst_19 = arith.constant dense<0xFF800000> : vector<1x16xf32>
    %60 = vector.multi_reduction <maximumf>, %59, %cst_19 [2] : vector<1x16x16xf32> to vector<1x16xf32>
    %61 = vector.shape_cast %60 : vector<1x16xf32> to vector<1x16x1xf32>
    %62 = vector.broadcast %61 : vector<1x16x1xf32> to vector<1x16x16xf32>
    %63 = arith.subf %59, %62 : vector<1x16x16xf32>
    %64 = math.exp %63 : vector<1x16x16xf32>
    %cst_20 = arith.constant dense<0.000000e+00> : vector<1x16xf32>
    %65 = vector.multi_reduction <add>, %64, %cst_20 [2] : vector<1x16x16xf32> to vector<1x16xf32>
    %66 = vector.shape_cast %65 : vector<1x16xf32> to vector<1x16x1xf32>
    %67 = tpu.reciprocal %66 {approx = true} : vector<1x16x1xf32> -> vector<1x16x1xf32>
    %68 = vector.broadcast %67 : vector<1x16x1xf32> to vector<1x16x16xf32>
    %69 = arith.mulf %64, %68 : vector<1x16x16xf32>
    %70 = arith.truncf %69 : vector<1x16x16xf32> to vector<1x16x16xbf16>
    "tpu.trace_start"() <{level = 10 : i32, message = "bns,bsd->bnd"}> : () -> ()
    %cst_21 = arith.constant dense<0.000000e+00> : vector<1x16x8xf32>
    %71 = tpu.matmul %70, %58, %cst_21 {dimension_numbers = #tpu.dot_dimension_numbers<[2], [1], [1], [2], [0, 0, 0, 1, 1, 2], [0], [0]>} : vector<1x16x16xbf16>, vector<1x16x8xbf16>, vector<1x16x8xf32> -> vector<1x16x8xf32>
    "tpu.trace_stop"() : () -> ()
    %72 = vector.extract_strided_slice %37 {offsets = [0, 0, 16], sizes = [1, 16, 8], strides = [1, 1, 1]} : vector<1x16x32xbf16> to vector<1x16x8xbf16>
    %73 = vector.extract_strided_slice %38 {offsets = [0, 0, 16], sizes = [1, 16, 8], strides = [1, 1, 1]} : vector<1x16x32xbf16> to vector<1x16x8xbf16>
    %74 = vector.extract_strided_slice %39 {offsets = [0, 0, 16], sizes = [1, 16, 8], strides = [1, 1, 1]} : vector<1x16x32xbf16> to vector<1x16x8xbf16>
    "tpu.trace_start"() <{level = 10 : i32, message = "bnd,bsd->bns"}> : () -> ()
    %cst_22 = arith.constant dense<0.000000e+00> : vector<1x16x16xf32>
    %75 = tpu.matmul %72, %73, %cst_22 {dimension_numbers = #tpu.dot_dimension_numbers<[2], [2], [1], [1], [0, 0, 0, 1, 1, 1], [0], [0]>} : vector<1x16x8xbf16>, vector<1x16x8xbf16>, vector<1x16x16xf32> -> vector<1x16x16xf32>
    "tpu.trace_stop"() : () -> ()
    %cst_23 = arith.constant dense<0xFF800000> : vector<1x16xf32>
    %76 = vector.multi_reduction <maximumf>, %75, %cst_23 [2] : vector<1x16x16xf32> to vector<1x16xf32>
    %77 = vector.shape_cast %76 : vector<1x16xf32> to vector<1x16x1xf32>
    %78 = vector.broadcast %77 : vector<1x16x1xf32> to vector<1x16x16xf32>
    %79 = arith.subf %75, %78 : vector<1x16x16xf32>
    %80 = math.exp %79 : vector<1x16x16xf32>
    %cst_24 = arith.constant dense<0.000000e+00> : vector<1x16xf32>
    %81 = vector.multi_reduction <add>, %80, %cst_24 [2] : vector<1x16x16xf32> to vector<1x16xf32>
    %82 = vector.shape_cast %81 : vector<1x16xf32> to vector<1x16x1xf32>
    %83 = tpu.reciprocal %82 {approx = true} : vector<1x16x1xf32> -> vector<1x16x1xf32>
    %84 = vector.broadcast %83 : vector<1x16x1xf32> to vector<1x16x16xf32>
    %85 = arith.mulf %80, %84 : vector<1x16x16xf32>
    %86 = arith.truncf %85 : vector<1x16x16xf32> to vector<1x16x16xbf16>
    "tpu.trace_start"() <{level = 10 : i32, message = "bns,bsd->bnd"}> : () -> ()
    %cst_25 = arith.constant dense<0.000000e+00> : vector<1x16x8xf32>
    %87 = tpu.matmul %86, %74, %cst_25 {dimension_numbers = #tpu.dot_dimension_numbers<[2], [1], [1], [2], [0, 0, 0, 1, 1, 2], [0], [0]>} : vector<1x16x16xbf16>, vector<1x16x8xbf16>, vector<1x16x8xf32> -> vector<1x16x8xf32>
    "tpu.trace_stop"() : () -> ()
    %88 = vector.extract_strided_slice %37 {offsets = [0, 0, 24], sizes = [1, 16, 8], strides = [1, 1, 1]} : vector<1x16x32xbf16> to vector<1x16x8xbf16>
    %89 = vector.extract_strided_slice %38 {offsets = [0, 0, 24], sizes = [1, 16, 8], strides = [1, 1, 1]} : vector<1x16x32xbf16> to vector<1x16x8xbf16>
    %90 = vector.extract_strided_slice %39 {offsets = [0, 0, 24], sizes = [1, 16, 8], strides = [1, 1, 1]} : vector<1x16x32xbf16> to vector<1x16x8xbf16>
    "tpu.trace_start"() <{level = 10 : i32, message = "bnd,bsd->bns"}> : () -> ()
    %cst_26 = arith.constant dense<0.000000e+00> : vector<1x16x16xf32>
    %91 = tpu.matmul %88, %89, %cst_26 {dimension_numbers = #tpu.dot_dimension_numbers<[2], [2], [1], [1], [0, 0, 0, 1, 1, 1], [0], [0]>} : vector<1x16x8xbf16>, vector<1x16x8xbf16>, vector<1x16x16xf32> -> vector<1x16x16xf32>
    "tpu.trace_stop"() : () -> ()
    %cst_27 = arith.constant dense<0xFF800000> : vector<1x16xf32>
    %92 = vector.multi_reduction <maximumf>, %91, %cst_27 [2] : vector<1x16x16xf32> to vector<1x16xf32>
    %93 = vector.shape_cast %92 : vector<1x16xf32> to vector<1x16x1xf32>
    %94 = vector.broadcast %93 : vector<1x16x1xf32> to vector<1x16x16xf32>
    %95 = arith.subf %91, %94 : vector<1x16x16xf32>
    %96 = math.exp %95 : vector<1x16x16xf32>
    %cst_28 = arith.constant dense<0.000000e+00> : vector<1x16xf32>
    %97 = vector.multi_reduction <add>, %96, %cst_28 [2] : vector<1x16x16xf32> to vector<1x16xf32>
    %98 = vector.shape_cast %97 : vector<1x16xf32> to vector<1x16x1xf32>
    %99 = tpu.reciprocal %98 {approx = true} : vector<1x16x1xf32> -> vector<1x16x1xf32>
    %100 = vector.broadcast %99 : vector<1x16x1xf32> to vector<1x16x16xf32>
    %101 = arith.mulf %96, %100 : vector<1x16x16xf32>
    %102 = arith.truncf %101 : vector<1x16x16xf32> to vector<1x16x16xbf16>
    "tpu.trace_start"() <{level = 10 : i32, message = "bns,bsd->bnd"}> : () -> ()
    %cst_29 = arith.constant dense<0.000000e+00> : vector<1x16x8xf32>
    %103 = tpu.matmul %102, %90, %cst_29 {dimension_numbers = #tpu.dot_dimension_numbers<[2], [1], [1], [2], [0, 0, 0, 1, 1, 2], [0], [0]>} : vector<1x16x16xbf16>, vector<1x16x8xbf16>, vector<1x16x8xf32> -> vector<1x16x8xf32>
    "tpu.trace_stop"() : () -> ()
    %104 = tpu.concatenate %55, %71, %87, %103 in 2 : vector<1x16x8xf32>, vector<1x16x8xf32>, vector<1x16x8xf32>, vector<1x16x8xf32> -> vector<1x16x32xf32>
    %105 = vector.shape_cast %104 : vector<1x16x32xf32> to vector<16x32xf32>
    %c0_30 = arith.constant 0 : index
    %c0_31 = arith.constant 0 : index
    %106 = vector.load %arg5[%c0_30, %c0_31] : memref<32x32xbf16, #tpu.memory_space<vmem>>, vector<32x32xbf16>
    %107 = arith.truncf %105 : vector<16x32xf32> to vector<16x32xbf16>
    %cst_32 = arith.constant dense<0.000000e+00> : vector<16x32xf32>
    %108 = tpu.matmul %107, %106, %cst_32 {dimension_numbers = #tpu.dot_dimension_numbers<[1], [0], [0], [1], [0, 0, 1, 1], [], []>} : vector<16x32xbf16>, vector<32x32xbf16>, vector<16x32xf32> -> vector<16x32xf32>
    %109 = arith.addf %1, %108 : vector<16x32xf32>
    %c0_33 = arith.constant 0 : index
    %c0_34 = arith.constant 0 : index
    %110 = vector.load %arg6[%c0_33, %c0_34] : memref<1x32xf32, #tpu.memory_space<vmem>>, vector<1x32xf32>
    %111 = vector.broadcast %110 : vector<1x32xf32> to vector<16x32xf32>
    %112 = arith.addf %109, %111 : vector<16x32xf32>
    %cst_35 = arith.constant dense<0.000000e+00> : vector<16xf32>
    %113 = vector.multi_reduction <add>, %112, %cst_35 [1] : vector<16x32xf32> to vector<16xf32>
    %114 = vector.shape_cast %113 : vector<16xf32> to vector<16x1xf32>
    %cst_36 = arith.constant 3.200000e+01 : f32
    %115 = vector.broadcast %cst_36 : f32 to vector<16x1xf32>
    %116 = arith.divf %114, %115 : vector<16x1xf32>
    %117 = vector.broadcast %116 : vector<16x1xf32> to vector<16x32xf32>
    %118 = arith.subf %112, %117 : vector<16x32xf32>
    %119 = arith.mulf %118, %118 : vector<16x32xf32>
    %cst_37 = arith.constant dense<0.000000e+00> : vector<16xf32>
    %120 = vector.multi_reduction <add>, %119, %cst_37 [1] : vector<16x32xf32> to vector<16xf32>
    %121 = vector.shape_cast %120 : vector<16xf32> to vector<16x1xf32>
    %cst_38 = arith.constant 3.200000e+01 : f32
    %122 = vector.broadcast %cst_38 : f32 to vector<16x1xf32>
    %123 = arith.divf %121, %122 : vector<16x1xf32>
    %124 = vector.broadcast %116 : vector<16x1xf32> to vector<16x32xf32>
    %125 = arith.subf %112, %124 : vector<16x32xf32>
    %cst_39 = arith.constant 9.99999974E-6 : f32
    %126 = vector.broadcast %cst_39 : f32 to vector<16x1xf32>
    %127 = arith.addf %123, %126 : vector<16x1xf32>
    %128 = math.rsqrt %127 : vector<16x1xf32>
    %129 = vector.broadcast %128 : vector<16x1xf32> to vector<16x32xf32>
    %130 = arith.mulf %125, %129 : vector<16x32xf32>
    %c0_40 = arith.constant 0 : index
    %c0_41 = arith.constant 0 : index
    %131 = vector.load %arg7[%c0_40, %c0_41] : memref<1x32xf32, #tpu.memory_space<vmem>>, vector<1x32xf32>
    %132 = vector.broadcast %131 : vector<1x32xf32> to vector<16x32xf32>
    %133 = arith.mulf %130, %132 : vector<16x32xf32>
    %c0_42 = arith.constant 0 : index
    %c0_43 = arith.constant 0 : index
    %134 = vector.load %arg8[%c0_42, %c0_43] : memref<1x32xf32, #tpu.memory_space<vmem>>, vector<1x32xf32>
    %135 = vector.broadcast %134 : vector<1x32xf32> to vector<16x32xf32>
    %136 = arith.addf %133, %135 : vector<16x32xf32>
    %c0_44 = arith.constant 0 : index
    %c0_45 = arith.constant 0 : index
    %137 = vector.load %arg9[%c0_44, %c0_45] : memref<32x128xbf16, #tpu.memory_space<vmem>>, vector<32x128xbf16>
    %138 = arith.truncf %136 : vector<16x32xf32> to vector<16x32xbf16>
    %cst_46 = arith.constant dense<0.000000e+00> : vector<16x128xf32>
    %139 = tpu.matmul %138, %137, %cst_46 {dimension_numbers = #tpu.dot_dimension_numbers<[1], [0], [0], [1], [0, 0, 1, 1], [], []>} : vector<16x32xbf16>, vector<32x128xbf16>, vector<16x128xf32> -> vector<16x128xf32>
    %c0_47 = arith.constant 0 : index
    %c0_48 = arith.constant 0 : index
    %140 = vector.load %arg10[%c0_47, %c0_48] : memref<1x128xf32, #tpu.memory_space<vmem>>, vector<1x128xf32>
    %141 = vector.broadcast %140 : vector<1x128xf32> to vector<16x128xf32>
    %142 = arith.addf %139, %141 : vector<16x128xf32>
    %cst_49 = arith.constant 5.000000e-01 : f32
    %143 = vector.broadcast %cst_49 : f32 to vector<16x128xf32>
    %144 = arith.mulf %143, %142 : vector<16x128xf32>
    %cst_50 = arith.constant 0.707106769 : f32
    %145 = vector.broadcast %cst_50 : f32 to vector<16x128xf32>
    %146 = arith.mulf %142, %145 : vector<16x128xf32>
    %147 = math.erf %146 : vector<16x128xf32>
    %cst_51 = arith.constant 1.000000e+00 : f32
    %148 = vector.broadcast %cst_51 : f32 to vector<16x128xf32>
    %149 = arith.addf %148, %147 : vector<16x128xf32>
    %150 = arith.mulf %144, %149 : vector<16x128xf32>
    %c0_52 = arith.constant 0 : index
    %c0_53 = arith.constant 0 : index
    %151 = vector.load %arg11[%c0_52, %c0_53] : memref<128x32xbf16, #tpu.memory_space<vmem>>, vector<128x32xbf16>
    %152 = arith.truncf %150 : vector<16x128xf32> to vector<16x128xbf16>
    %cst_54 = arith.constant dense<0.000000e+00> : vector<16x32xf32>
    %153 = tpu.matmul %152, %151, %cst_54 {dimension_numbers = #tpu.dot_dimension_numbers<[1], [0], [0], [1], [0, 0, 1, 1], [], []>} : vector<16x128xbf16>, vector<128x32xbf16>, vector<16x32xf32> -> vector<16x32xf32>
    %154 = arith.addf %112, %153 : vector<16x32xf32>
    %c0_55 = arith.constant 0 : index
    %c0_56 = arith.constant 0 : index
    %155 = vector.load %arg12[%c0_55, %c0_56] : memref<1x32xf32, #tpu.memory_space<vmem>>, vector<1x32xf32>
    %156 = vector.broadcast %155 : vector<1x32xf32> to vector<16x32xf32>
    %157 = arith.addf %154, %156 : vector<16x32xf32>
    %158 = vector.shape_cast %157 : vector<16x32xf32> to vector<1x16x32xf32>
    %c0_57 = arith.constant 0 : index
    %c0_58 = arith.constant 0 : index
    %c0_59 = arith.constant 0 : index
    %159 = vector.load %arg13[%c0_57, %c0_58, %c0_59] : memref<1x16x32xf32, #tpu.memory_space<vmem>>, vector<1x16x32xf32>
    tpu.vector_store %arg13[%c0_57, %c0_58, %c0_59], %158 {strides = array<i32>} : memref<1x16x32xf32, #tpu.memory_space<vmem>>, vector<1x16x32xf32>,
    return
  }
  func.func @transform_0(%arg0: i32) -> (i32, i32, i32) {
    %c0_i32 = arith.constant 0 : i32
    %c0_i32_0 = arith.constant 0 : i32
    %c0_i32_1 = arith.constant 0 : i32
    return %arg0, %c0_i32, %c0_i32_0 : i32, i32, i32
  }
  func.func @transform_1(%arg0: i32) -> (i32, i32) {
    %c0_i32 = arith.constant 0 : i32
    %c0_i32_0 = arith.constant 0 : i32
    %c0_i32_1 = arith.constant 0 : i32
    return %c0_i32, %c0_i32_0 : i32, i32
  }
  func.func @transform_2(%arg0: i32) -> (i32, i32) {
    %c0_i32 = arith.constant 0 : i32
    %c0_i32_0 = arith.constant 0 : i32
    %c0_i32_1 = arith.constant 0 : i32
    return %c0_i32, %c0_i32_0 : i32, i32
  }
  func.func @transform_3(%arg0: i32) -> (i32, i32) {
    %c0_i32 = arith.constant 0 : i32
    %c0_i32_0 = arith.constant 0 : i32
    %c0_i32_1 = arith.constant 0 : i32
    return %c0_i32, %c0_i32_0 : i32, i32
  }
  func.func @transform_4(%arg0: i32) -> (i32, i32) {
    %c0_i32 = arith.constant 0 : i32
    %c0_i32_0 = arith.constant 0 : i32
    %c0_i32_1 = arith.constant 0 : i32
    return %c0_i32, %c0_i32_0 : i32, i32
  }
  func.func @transform_5(%arg0: i32) -> (i32, i32) {
    %c0_i32 = arith.constant 0 : i32
    %c0_i32_0 = arith.constant 0 : i32
    %c0_i32_1 = arith.constant 0 : i32
    return %c0_i32, %c0_i32_0 : i32, i32
  }
  func.func @transform_6(%arg0: i32) -> (i32, i32) {
    %c0_i32 = arith.constant 0 : i32
    %c0_i32_0 = arith.constant 0 : i32
    %c0_i32_1 = arith.constant 0 : i32
    return %c0_i32, %c0_i32_0 : i32, i32
  }
  func.func @transform_7(%arg0: i32) -> (i32, i32) {
    %c0_i32 = arith.constant 0 : i32
    %c0_i32_0 = arith.constant 0 : i32
    %c0_i32_1 = arith.constant 0 : i32
    return %c0_i32, %c0_i32_0 : i32, i32
  }
  func.func @transform_8(%arg0: i32) -> (i32, i32) {
    %c0_i32 = arith.constant 0 : i32
    %c0_i32_0 = arith.constant 0 : i32
    %c0_i32_1 = arith.constant 0 : i32
    return %c0_i32, %c0_i32_0 : i32, i32
  }
  func.func @transform_9(%arg0: i32) -> (i32, i32) {
    %c0_i32 = arith.constant 0 : i32
    %c0_i32_0 = arith.constant 0 : i32
    %c0_i32_1 = arith.constant 0 : i32
    return %c0_i32, %c0_i32_0 : i32, i32
  }
  func.func @transform_10(%arg0: i32) -> (i32, i32) {
    %c0_i32 = arith.constant 0 : i32
    %c0_i32_0 = arith.constant 0 : i32
    %c0_i32_1 = arith.constant 0 : i32
    return %c0_i32, %c0_i32_0 : i32, i32
  }
  func.func @transform_11(%arg0: i32) -> (i32, i32) {
    %c0_i32 = arith.constant 0 : i32
    %c0_i32_0 = arith.constant 0 : i32
    %c0_i32_1 = arith.constant 0 : i32
    return %c0_i32, %c0_i32_0 : i32, i32
  }
  func.func @transform_12(%arg0: i32) -> (i32, i32, i32) {
    %c0_i32 = arith.constant 0 : i32
    %c0_i32_0 = arith.constant 0 : i32
    %c0_i32_1 = arith.constant 0 : i32
    return %arg0, %c0_i32, %c0_i32_0 : i32, i32, i32
  }
}

module attributes {stable_mosaic.version = 11 : i64} {
  func.func @kernel(%arg0: i32, %arg1: memref<1x16x32xf32, #tpu.memory_space<vmem>>, %arg2: memref<1x32xf32, #tpu.memory_space<vmem>>, %arg3: memref<1x32xf32, #tpu.memory_space<vmem>>, %arg4: memref<32x96xbf16, #tpu.memory_space<vmem>>, %arg5: memref<32x32xbf16, #tpu.memory_space<vmem>>, %arg6: memref<1x32xf32, #tpu.memory_space<vmem>>, %arg7: memref<1x32xf32, #tpu.memory_space<vmem>>, %arg8: memref<1x32xf32, #tpu.memory_space<vmem>>, %arg9: memref<32x128xbf16, #tpu.memory_space<vmem>>, %arg10: memref<1x128xf32, #tpu.memory_space<vmem>>, %arg11: memref<128x32xbf16, #tpu.memory_space<vmem>>, %arg12: memref<1x32xf32, #tpu.memory_space<vmem>>, %arg13: memref<1x16x32xf32, #tpu.memory_space<vmem>>) attributes {dimension_semantics = [#tpu.dimension_semantics<parallel>], iteration_bounds = array<i64: 2>, scalar_prefetch = 0 : i64, scratch_operands = 0 : i64, tpu.core_type = #tpu.core_type<tc>, window_params = [{transform_indices = @transform_0, window_bounds = array<i64: 1, 16, 32>}, {pipeline_mode = #tpu.pipeline_mode<synchronous>, transform_indices = @transform_1, window_bounds = array<i64: 1, 32>}, {pipeline_mode = #tpu.pipeline_mode<synchronous>, transform_indices = @transform_2, window_bounds = array<i64: 1, 32>}, {pipeline_mode = #tpu.pipeline_mode<synchronous>, transform_indices = @transform_3, window_bounds = array<i64: 32, 96>}, {pipeline_mode = #tpu.pipeline_mode<synchronous>, transform_indices = @transform_4, window_bounds = array<i64: 32, 32>}, {pipeline_mode = #tpu.pipeline_mode<synchronous>, transform_indices = @transform_5, window_bounds = array<i64: 1, 32>}, {pipeline_mode = #tpu.pipeline_mode<synchronous>, transform_indices = @transform_6, window_bounds = array<i64: 1, 32>}, {pipeline_mode = #tpu.pipeline_mode<synchronous>, transform_indices = @transform_7, window_bounds = array<i64: 1, 32>}, {pipeline_mode = #tpu.pipeline_mode<synchronous>, transform_indices = @transform_8, window_bounds = array<i64: 32, 128>}, {pipeline_mode = #tpu.pipeline_mode<synchronous>, transform_indices = @transform_9, window_bounds = array<i64: 1, 128>}, {pipeline_mode = #tpu.pipeline_mode<synchronous>, transform_indices = @transform_10, window_bounds = array<i64: 128, 32>}, {pipeline_mode = #tpu.pipeline_mode<synchronous>, transform_indices = @transform_11, window_bounds = array<i64: 1, 32>}, {transform_indices = @transform_12, window_bounds = array<i64: 1, 16, 32>}]} {
    %c0 = arith.constant 0 : index
    %c0_0 = arith.constant 0 : index
    %c0_1 = arith.constant 0 : index
    %0 = vector.load %arg1[%c0, %c0_0, %c0_1] : memref<1x16x32xf32, #tpu.memory_space<vmem>>, vector<1x16x32xf32>
    %1 = vector.shape_cast %0 : vector<1x16x32xf32> to vector<16x32xf32>
    %cst = arith.constant dense<0.000000e+00> : vector<16xf32>
    %2 = vector.multi_reduction <add>, %1, %cst [1] : vector<16x32xf32> to vector<16xf32>
    %3 = vector.shape_cast %2 : vector<16xf32> to vector<16x1xf32>
    %cst_2 = arith.constant 3.200000e+01 : f32
    %4 = vector.broadcast %cst_2 : f32 to vector<16x1xf32>
    %5 = arith.divf %3, %4 : vector<16x1xf32>
    %6 = vector.broadcast %5 : vector<16x1xf32> to vector<16x32xf32>
    %7 = arith.subf %1, %6 : vector<16x32xf32>
    %8 = arith.mulf %7, %7 : vector<16x32xf32>
    %cst_3 = arith.constant dense<0.000000e+00> : vector<16xf32>
    %9 = vector.multi_reduction <add>, %8, %cst_3 [1] : vector<16x32xf32> to vector<16xf32>
    %10 = vector.shape_cast %9 : vector<16xf32> to vector<16x1xf32>
    %cst_4 = arith.constant 3.200000e+01 : f32
    %11 = vector.broadcast %cst_4 : f32 to vector<16x1xf32>
    %12 = arith.divf %10, %11 : vector<16x1xf32>
    %13 = vector.broadcast %5 : vector<16x1xf32> to vector<16x32xf32>
    %14 = arith.subf %1, %13 : vector<16x32xf32>
    %cst_5 = arith.constant 9.99999974E-6 : f32
    %15 = vector.broadcast %cst_5 : f32 to vector<16x1xf32>
    %16 = arith.addf %12, %15 : vector<16x1xf32>
    %17 = math.rsqrt %16 : vector<16x1xf32>
    %18 = vector.broadcast %17 : vector<16x1xf32> to vector<16x32xf32>
    %19 = arith.mulf %14, %18 : vector<16x32xf32>
    %c0_6 = arith.constant 0 : index
    %c0_7 = arith.constant 0 : index
    %20 = vector.load %arg2[%c0_6, %c0_7] : memref<1x32xf32, #tpu.memory_space<vmem>>, vector<1x32xf32>
    %21 = vector.broadcast %20 : vector<1x32xf32> to vector<16x32xf32>
    %22 = arith.mulf %19, %21 : vector<16x32xf32>
    %c0_8 = arith.constant 0 : index
    %c0_9 = arith.constant 0 : index
    %23 = vector.load %arg3[%c0_8, %c0_9] : memref<1x32xf32, #tpu.memory_space<vmem>>, vector<1x32xf32>
    %24 = vector.broadcast %23 : vector<1x32xf32> to vector<16x32xf32>
    %25 = arith.addf %22, %24 : vector<16x32xf32>
    %c0_10 = arith.constant 0 : index
    %c0_11 = arith.constant 0 : index
    %26 = vector.load %arg4[%c0_10, %c0_11] : memref<32x96xbf16, #tpu.memory_space<vmem>>, vector<32x96xbf16>
    %27 = arith.truncf %25 : vector<16x32xf32> to vector<16x32xbf16>
    %cst_12 = arith.constant dense<0.000000e+00> : vector<16x96xf32>
    %28 = tpu.matmul %27, %26, %cst_12 {dimension_numbers = #tpu.dot_dimension_numbers<[1], [0], [0], [1], [0, 0, 1, 1], [], []>} : vector<16x32xbf16>, vector<32x96xbf16>, vector<16x96xf32> -> vector<16x96xf32>
    %29 = vector.extract_strided_slice %28 {offsets = [0, 0], sizes = [16, 32], strides = [1, 1]} : vector<16x96xf32> to vector<16x32xf32>
    %cst_13 = arith.constant 0.353553385 : f32
    %30 = vector.broadcast %cst_13 : f32 to vector<16x32xf32>
    %31 = arith.mulf %29, %30 : vector<16x32xf32>
    %32 = vector.shape_cast %31 : vector<16x32xf32> to vector<1x16x32xf32>
    %33 = vector.extract_strided_slice %28 {offsets = [0, 32], sizes = [16, 32], strides = [1, 1]} : vector<16x96xf32> to vector<16x32xf32>
    %34 = vector.shape_cast %33 : vector<16x32xf32> to vector<1x16x32xf32>
    %35 = vector.extract_strided_slice %28 {offsets = [0, 64], sizes = [16, 32], strides = [1, 1]} : vector<16x96xf32> to vector<16x32xf32>
    %36 = vector.shape_cast %35 : vector<16x32xf32> to vector<1x16x32xf32>
    %37 = arith.truncf %32 : vector<1x16x32xf32> to vector<1x16x32xbf16>
    %38 = arith.truncf %34 : vector<1x16x32xf32> to vector<1x16x32xbf16>
    %39 = arith.truncf %36 : vector<1x16x32xf32> to vector<1x16x32xbf16>
    %40 = vector.extract_strided_slice %37 {offsets = [0, 0, 0], sizes = [1, 16, 8], strides = [1, 1, 1]} : vector<1x16x32xbf16> to vector<1x16x8xbf16>
    %41 = vector.extract_strided_slice %38 {offsets = [0, 0, 0], sizes = [1, 16, 8], strides = [1, 1, 1]} : vector<1x16x32xbf16> to vector<1x16x8xbf16>
    %42 = vector.extract_strided_slice %39 {offsets = [0, 0, 0], sizes = [1, 16, 8], strides = [1, 1, 1]} : vector<1x16x32xbf16> to vector<1x16x8xbf16>
    "tpu.trace_start"() <{level = 10 : i32, message = "bnd,bsd->bns"}> : () -> ()
    %cst_14 = arith.constant dense<0.000000e+00> : vector<1x16x16xf32>
    %43 = tpu.matmul %40, %41, %cst_14 {dimension_numbers = #tpu.dot_dimension_numbers<[2], [2], [1], [1], [0, 0, 0, 1, 1, 1], [0], [0]>} : vector<1x16x8xbf16>, vector<1x16x8xbf16>, vector<1x16x16xf32> -> vector<1x16x16xf32>
    "tpu.trace_stop"() : () -> ()
    %cst_15 = arith.constant dense<0xFF800000> : vector<1x16xf32>
    %44 = vector.multi_reduction <maximumf>, %43, %cst_15 [2] : vector<1x16x16xf32> to vector<1x16xf32>
    %45 = vector.shape_cast %44 : vector<1x16xf32> to vector<1x16x1xf32>
    %46 = vector.broadcast %45 : vector<1x16x1xf32> to vector<1x16x16xf32>
    %47 = arith.subf %43, %46 : vector<1x16x16xf32>
    %48 = math.exp %47 : vector<1x16x16xf32>
    %cst_16 = arith.constant dense<0.000000e+00> : vector<1x16xf32>
    %49 = vector.multi_reduction <add>, %48, %cst_16 [2] : vector<1x16x16xf32> to vector<1x16xf32>
    %50 = vector.shape_cast %49 : vector<1x16xf32> to vector<1x16x1xf32>
    %51 = tpu.reciprocal %50 {approx = true} : vector<1x16x1xf32> -> vector<1x16x1xf32>
    %52 = vector.broadcast %51 : vector<1x16x1xf32> to vector<1x16x16xf32>
    %53 = arith.mulf %48, %52 : vector<1x16x16xf32>
    %54 = arith.truncf %53 : vector<1x16x16xf32> to vector<1x16x16xbf16>
    "tpu.trace_start"() <{level = 10 : i32, message = "bns,bsd->bnd"}> : () -> ()
    %cst_17 = arith.constant dense<0.000000e+00> : vector<1x16x8xf32>
    %55 = tpu.matmul %54, %42, %cst_17 {dimension_numbers = #tpu.dot_dimension_numbers<[2], [1], [1], [2], [0, 0, 0, 1, 1, 2], [0], [0]>} : vector<1x16x16xbf16>, vector<1x16x8xbf16>, vector<1x16x8xf32> -> vector<1x16x8xf32>
    "tpu.trace_stop"() : () -> ()
    %56 = vector.extract_strided_slice %37 {offsets = [0, 0, 8], sizes = [1, 16, 8], strides = [1, 1, 1]} : vector<1x16x32xbf16> to vector<1x16x8xbf16>
    %57 = vector.extract_strided_slice %38 {offsets = [0, 0, 8], sizes = [1, 16, 8], strides = [1, 1, 1]} : vector<1x16x32xbf16> to vector<1x16x8xbf16>
    %58 = vector.extract_strided_slice %39 {offsets = [0, 0, 8], sizes = [1, 16, 8], strides = [1, 1, 1]} : vector<1x16x32xbf16> to vector<1x16x8xbf16>
    "tpu.trace_start"() <{level = 10 : i32, message = "bnd,bsd->bns"}> : () -> ()
    %cst_18 = arith.constant dense<0.000000e+00> : vector<1x16x16xf32>
    %59 = tpu.matmul %56, %57, %cst_18 {dimension_numbers = #tpu.dot_dimension_numbers<[2], [2], [1], [1], [0, 0, 0, 1, 1, 1], [0], [0]>} : vector<1x16x8xbf16>, vector<1x16x8xbf16>, vector<1x16x16xf32> -> vector<1x16x16xf32>
    "tpu.trace_stop"() : () -> ()
    %cst_19 = arith.constant dense<0xFF800000> : vector<1x16xf32>
    %60 = vector.multi_reduction <maximumf>, %59, %cst_19 [2] : vector<1x16x16xf32> to vector<1x16xf32>
    %61 = vector.shape_cast %60 : vector<1x16xf32> to vector<1x16x1xf32>
    %62 = vector.broadcast %61 : vector<1x16x1xf32> to vector<1x16x16xf32>
    %63 = arith.subf %59, %62 : vector<1x16x16xf32>
    %64 = math.exp %63 : vector<1x16x16xf32>
    %cst_20 = arith.constant dense<0.000000e+00> : vector<1x16xf32>
    %65 = vector.multi_reduction <add>, %64, %cst_20 [2] : vector<1x16x16xf32> to vector<1x16xf32>
    %66 = vector.shape_cast %65 : vector<1x16xf32> to vector<1x16x1xf32>
    %67 = tpu.reciprocal %66 {approx = true} : vector<1x16x1xf32> -> vector<1x16x1xf32>
    %68 = vector.broadcast %67 : vector<1x16x1xf32> to vector<1x16x16xf32>
    %69 = arith.mulf %64, %68 : vector<1x16x16xf32>
    %70 = arith.truncf %69 : vector<1x16x16xf32> to vector<1x16x16xbf16>
    "tpu.trace_start"() <{level = 10 : i32, message = "bns,bsd->bnd"}> : () -> ()
    %cst_21 = arith.constant dense<0.000000e+00> : vector<1x16x8xf32>
    %71 = tpu.matmul %70, %58, %cst_21 {dimension_numbers = #tpu.dot_dimension_numbers<[2], [1], [1], [2], [0, 0, 0, 1, 1, 2], [0], [0]>} : vector<1x16x16xbf16>, vector<1x16x8xbf16>, vector<1x16x8xf32> -> vector<1x16x8xf32>
    "tpu.trace_stop"() : () -> ()
    %72 = vector.extract_strided_slice %37 {offsets = [0, 0, 16], sizes = [1, 16, 8], strides = [1, 1, 1]} : vector<1x16x32xbf16> to vector<1x16x8xbf16>
    %73 = vector.extract_strided_slice %38 {offsets = [0, 0, 16], sizes = [1, 16, 8], strides = [1, 1, 1]} : vector<1x16x32xbf16> to vector<1x16x8xbf16>
    %74 = vector.extract_strided_slice %39 {offsets = [0, 0, 16], sizes = [1, 16, 8], strides = [1, 1, 1]} : vector<1x16x32xbf16> to vector<1x16x8xbf16>
    "tpu.trace_start"() <{level = 10 : i32, message = "bnd,bsd->bns"}> : () -> ()
    %cst_22 = arith.constant dense<0.000000e+00> : vector<1x16x16xf32>
    %75 = tpu.matmul %72, %73, %cst_22 {dimension_numbers = #tpu.dot_dimension_numbers<[2], [2], [1], [1], [0, 0, 0, 1, 1, 1], [0], [0]>} : vector<1x16x8xbf16>, vector<1x16x8xbf16>, vector<1x16x16xf32> -> vector<1x16x16xf32>
    "tpu.trace_stop"() : () -> ()
    %cst_23 = arith.constant dense<0xFF800000> : vector<1x16xf32>
    %76 = vector.multi_reduction <maximumf>, %75, %cst_23 [2] : vector<1x16x16xf32> to vector<1x16xf32>
    %77 = vector.shape_cast %76 : vector<1x16xf32> to vector<1x16x1xf32>
    %78 = vector.broadcast %77 : vector<1x16x1xf32> to vector<1x16x16xf32>
    %79 = arith.subf %75, %78 : vector<1x16x16xf32>
    %80 = math.exp %79 : vector<1x16x16xf32>
    %cst_24 = arith.constant dense<0.000000e+00> : vector<1x16xf32>
    %81 = vector.multi_reduction <add>, %80, %cst_24 [2] : vector<1x16x16xf32> to vector<1x16xf32>
    %82 = vector.shape_cast %81 : vector<1x16xf32> to vector<1x16x1xf32>
    %83 = tpu.reciprocal %82 {approx = true} : vector<1x16x1xf32> -> vector<1x16x1xf32>
    %84 = vector.broadcast %83 : vector<1x16x1xf32> to vector<1x16x16xf32>
    %85 = arith.mulf %80, %84 : vector<1x16x16xf32>
    %86 = arith.truncf %85 : vector<1x16x16xf32> to vector<1x16x16xbf16>
    "tpu.trace_start"() <{level = 10 : i32, message = "bns,bsd->bnd"}> : () -> ()
    %cst_25 = arith.constant dense<0.000000e+00> : vector<1x16x8xf32>
    %87 = tpu.matmul %86, %74, %cst_25 {dimension_numbers = #tpu.dot_dimension_numbers<[2], [1], [1], [2], [0, 0, 0, 1, 1, 2], [0], [0]>} : vector<1x16x16xbf16>, vector<1x16x8xbf16>, vector<1x16x8xf32> -> vector<1x16x8xf32>
    "tpu.trace_stop"() : () -> ()
    %88 = vector.extract_strided_slice %37 {offsets = [0, 0, 24], sizes = [1, 16, 8], strides = [1, 1, 1]} : vector<1x16x32xbf16> to vector<1x16x8xbf16>
    %89 = vector.extract_strided_slice %38 {offsets = [0, 0, 24], sizes = [1, 16, 8], strides = [1, 1, 1]} : vector<1x16x32xbf16> to vector<1x16x8xbf16>
    %90 = vector.extract_strided_slice %39 {offsets = [0, 0, 24], sizes = [1, 16, 8], strides = [1, 1, 1]} : vector<1x16x32xbf16> to vector<1x16x8xbf16>
    "tpu.trace_start"() <{level = 10 : i32, message = "bnd,bsd->bns"}> : () -> ()
    %cst_26 = arith.constant dense<0.000000e+00> : vector<1x16x16xf32>
    %91 = tpu.matmul %88, %89, %cst_26 {dimension_numbers = #tpu.dot_dimension_numbers<[2], [2], [1], [1], [0, 0, 0, 1, 1, 1], [0], [0]>} : vector<1x16x8xbf16>, vector<1x16x8xbf16>, vector<1x16x16xf32> -> vector<1x16x16xf32>
    "tpu.trace_stop"() : () -> ()
    %cst_27 = arith.constant dense<0xFF800000> : vector<1x16xf32>
    %92 = vector.multi_reduction <maximumf>, %91, %cst_27 [2] : vector<1x16x16xf32> to vector<1x16xf32>
    %93 = vector.shape_cast %92 : vector<1x16xf32> to vector<1x16x1xf32>
    %94 = vector.broadcast %93 : vector<1x16x1xf32> to vector<1x16x16xf32>
    %95 = arith.subf %91, %94 : vector<1x16x16xf32>
    %96 = math.exp %95 : vector<1x16x16xf32>
    %cst_28 = arith.constant dense<0.000000e+00> : vector<1x16xf32>
    %97 = vector.multi_reduction <add>, %96, %cst_28 [2] : vector<1x16x16xf32> to vector<1x16xf32>
    %98 = vector.shape_cast %97 : vector<1x16xf32> to vector<1x16x1xf32>
    %99 = tpu.reciprocal %98 {approx = true} : vector<1x16x1xf32> -> vector<1x16x1xf32>
    %100 = vector.broadcast %99 : vector<1x16x1xf32> to vector<1x16x16xf32>
    %101 = arith.mulf %96, %100 : vector<1x16x16xf32>
    %102 = arith.truncf %101 : vector<1x16x16xf32> to vector<1x16x16xbf16>
    "tpu.trace_start"() <{level = 10 : i32, message = "bns,bsd->bnd"}> : () -> ()
    %cst_29 = arith.constant dense<0.000000e+00> : vector<1x16x8xf32>
    %103 = tpu.matmul %102, %90, %cst_29 {dimension_numbers = #tpu.dot_dimension_numbers<[2], [1], [1], [2], [0, 0, 0, 1, 1, 2], [0], [0]>} : vector<1x16x16xbf16>, vector<1x16x8xbf16>, vector<1x16x8xf32> -> vector<1x16x8xf32>
    "tpu.trace_stop"() : () -> ()
    %104 = tpu.concatenate %55, %71, %87, %103 in 2 : vector<1x16x8xf32>, vector<1x16x8xf32>, vector<1x16x8xf32>, vector<1x16x8xf32> -> vector<1x16x32xf32>
    %105 = vector.shape_cast %104 : vector<1x16x32xf32> to vector<16x32xf32>
    %c0_30 = arith.constant 0 : index
    %c0_31 = arith.constant 0 : index
    %106 = vector.load %arg5[%c0_30, %c0_31] : memref<32x32xbf16, #tpu.memory_space<vmem>>, vector<32x32xbf16>
    %107 = arith.truncf %105 : vector<16x32xf32> to vector<16x32xbf16>
    %cst_32 = arith.constant dense<0.000000e+00> : vector<16x32xf32>
    %108 = tpu.matmul %107, %106, %cst_32 {dimension_numbers = #tpu.dot_dimension_numbers<[1], [0], [0], [1], [0, 0, 1, 1], [], []>} : vector<16x32xbf16>, vector<32x32xbf16>, vector<16x32xf32> -> vector<16x32xf32>
    %109 = arith.addf %1, %108 : vector<16x32xf32>
    %c0_33 = arith.constant 0 : index
    %c0_34 = arith.constant 0 : index
    %110 = vector.load %arg6[%c0_33, %c0_34] : memref<1x32xf32, #tpu.memory_space<vmem>>, vector<1x32xf32>
    %111 = vector.broadcast %110 : vector<1x32xf32> to vector<16x32xf32>
    %112 = arith.addf %109, %111 : vector<16x32xf32>
    %cst_35 = arith.constant dense<0.000000e+00> : vector<16xf32>
    %113 = vector.multi_reduction <add>, %112, %cst_35 [1] : vector<16x32xf32> to vector<16xf32>
    %114 = vector.shape_cast %113 : vector<16xf32> to vector<16x1xf32>
    %cst_36 = arith.constant 3.200000e+01 : f32
    %115 = vector.broadcast %cst_36 : f32 to vector<16x1xf32>
    %116 = arith.divf %114, %115 : vector<16x1xf32>
    %117 = vector.broadcast %116 : vector<16x1xf32> to vector<16x32xf32>
    %118 = arith.subf %112, %117 : vector<16x32xf32>
    %119 = arith.mulf %118, %118 : vector<16x32xf32>
    %cst_37 = arith.constant dense<0.000000e+00> : vector<16xf32>
    %120 = vector.multi_reduction <add>, %119, %cst_37 [1] : vector<16x32xf32> to vector<16xf32>
    %121 = vector.shape_cast %120 : vector<16xf32> to vector<16x1xf32>
    %cst_38 = arith.constant 3.200000e+01 : f32
    %122 = vector.broadcast %cst_38 : f32 to vector<16x1xf32>
    %123 = arith.divf %121, %122 : vector<16x1xf32>
    %124 = vector.broadcast %116 : vector<16x1xf32> to vector<16x32xf32>
    %125 = arith.subf %112, %124 : vector<16x32xf32>
    %cst_39 = arith.constant 9.99999974E-6 : f32
    %126 = vector.broadcast %cst_39 : f32 to vector<16x1xf32>
    %127 = arith.addf %123, %126 : vector<16x1xf32>
    %128 = math.rsqrt %127 : vector<16x1xf32>
    %129 = vector.broadcast %128 : vector<16x1xf32> to vector<16x32xf32>
    %130 = arith.mulf %125, %129 : vector<16x32xf32>
    %c0_40 = arith.constant 0 : index
    %c0_41 = arith.constant 0 : index
    %131 = vector.load %arg7[%c0_40, %c0_41] : memref<1x32xf32, #tpu.memory_space<vmem>>, vector<1x32xf32>
    %132 = vector.broadcast %131 : vector<1x32xf32> to vector<16x32xf32>
    %133 = arith.mulf %130, %132 : vector<16x32xf32>
    %c0_42 = arith.constant 0 : index
    %c0_43 = arith.constant 0 : index
    %134 = vector.load %arg8[%c0_42, %c0_43] : memref<1x32xf32, #tpu.memory_space<vmem>>, vector<1x32xf32>
    %135 = vector.broadcast %134 : vector<1x32xf32> to vector<16x32xf32>
    %136 = arith.addf %133, %135 : vector<16x32xf32>
    %c0_44 = arith.constant 0 : index
    %c0_45 = arith.constant 0 : index
    %137 = vector.load %arg9[%c0_44, %c0_45] : memref<32x128xbf16, #tpu.memory_space<vmem>>, vector<32x128xbf16>
    %138 = arith.truncf %136 : vector<16x32xf32> to vector<16x32xbf16>
    %cst_46 = arith.constant dense<0.000000e+00> : vector<16x128xf32>
    %139 = tpu.matmul %138, %137, %cst_46 {dimension_numbers = #tpu.dot_dimension_numbers<[1], [0], [0], [1], [0, 0, 1, 1], [], []>} : vector<16x32xbf16>, vector<32x128xbf16>, vector<16x128xf32> -> vector<16x128xf32>
    %c0_47 = arith.constant 0 : index
    %c0_48 = arith.constant 0 : index
    %140 = vector.load %arg10[%c0_47, %c0_48] : memref<1x128xf32, #tpu.memory_space<vmem>>, vector<1x128xf32>
    %141 = vector.broadcast %140 : vector<1x128xf32> to vector<16x128xf32>
    %142 = arith.addf %139, %141 : vector<16x128xf32>
    %cst_49 = arith.constant 5.000000e-01 : f32
    %143 = vector.broadcast %cst_49 : f32 to vector<16x128xf32>
    %144 = arith.mulf %143, %142 : vector<16x128xf32>
    %cst_50 = arith.constant 0.707106769 : f32
    %145 = vector.broadcast %cst_50 : f32 to vector<16x128xf32>
    %146 = arith.mulf %142, %145 : vector<16x128xf32>
    %147 = math.erf %146 : vector<16x128xf32>
    %cst_51 = arith.constant 1.000000e+00 : f32
    %148 = vector.broadcast %cst_51 : f32 to vector<16x128xf32>
    %149 = arith.addf %148, %147 : vector<16x128xf32>
    %150 = arith.mulf %144, %149 : vector<16x128xf32>
    %c0_52 = arith.constant 0 : index
    %c0_53 = arith.constant 0 : index
    %151 = vector.load %arg11[%c0_52, %c0_53] : memref<128x32xbf16, #tpu.memory_space<vmem>>, vector<128x32xbf16>
    %152 = arith.truncf %150 : vector<16x128xf32> to vector<16x128xbf16>
    %cst_54 = arith.constant dense<0.000000e+00> : vector<16x32xf32>
    %153 = tpu.matmul %152, %151, %cst_54 {dimension_numbers = #tpu.dot_dimension_numbers<[1], [0], [0], [1], [0, 0, 1, 1], [], []>} : vector<16x128xbf16>, vector<128x32xbf16>, vector<16x32xf32> -> vector<16x32xf32>
    %154 = arith.addf %112, %153 : vector<16x32xf32>
    %c0_55 = arith.constant 0 : index
    %c0_56 = arith.constant 0 : index
    %155 = vector.load %arg12[%c0_55, %c0_56] : memref<1x32xf32, #tpu.memory_space<vmem>>, vector<1x32xf32>
    %156 = vector.broadcast %155 : vector<1x32xf32> to vector<16x32xf32>
    %157 = arith.addf %154, %156 : vector<16x32xf32>
    %158 = vector.shape_cast %157 : vector<16x32xf32> to vector<1x16x32xf32>
    %c0_57 = arith.constant 0 : index
    %c0_58 = arith.constant 0 : index
    %c0_59 = arith.constant 0 : index
    %159 = vector.load %arg13[%c0_57, %c0_58, %c0_59] : memref<1x16x32xf32, #tpu.memory_space<vmem>>, vector<1x16x32xf32>
    tpu.vector_store %arg13[%c0_57, %c0_58, %c0_59], %158 {strides = array<i32>} : memref<1x16x32xf32, #tpu.memory_space<vmem>>, vector<1x16x32xf32>,
    return
  }
  func.func @transform_0(%arg0: i32) -> (i32, i32, i32) {
    %c0_i32 = arith.constant 0 : i32
    %c0_i32_0 = arith.constant 0 : i32
    %c0_i32_1 = arith.constant 0 : i32
    return %arg0, %c0_i32, %c0_i32_0 : i32, i32, i32
  }
  func.func @transform_1(%arg0: i32) -> (i32, i32) {
    %c0_i32 = arith.constant 0 : i32
    %c0_i32_0 = arith.constant 0 : i32
    %c0_i32_1 = arith.constant 0 : i32
    return %c0_i32, %c0_i32_0 : i32, i32
  }
  func.func @transform_2(%arg0: i32) -> (i32, i32) {
    %c0_i32 = arith.constant 0 : i32
    %c0_i32_0 = arith.constant 0 : i32
    %c0_i32_1 = arith.constant 0 : i32
    return %c0_i32, %c0_i32_0 : i32, i32
  }
  func.func @transform_3(%arg0: i32) -> (i32, i32) {
    %c0_i32 = arith.constant 0 : i32
    %c0_i32_0 = arith.constant 0 : i32
    %c0_i32_1 = arith.constant 0 : i32
    return %c0_i32, %c0_i32_0 : i32, i32
  }
  func.func @transform_4(%arg0: i32) -> (i32, i32) {
    %c0_i32 = arith.constant 0 : i32
    %c0_i32_0 = arith.constant 0 : i32
    %c0_i32_1 = arith.constant 0 : i32
    return %c0_i32, %c0_i32_0 : i32, i32
  }
  func.func @transform_5(%arg0: i32) -> (i32, i32) {
    %c0_i32 = arith.constant 0 : i32
    %c0_i32_0 = arith.constant 0 : i32
    %c0_i32_1 = arith.constant 0 : i32
    return %c0_i32, %c0_i32_0 : i32, i32
  }
  func.func @transform_6(%arg0: i32) -> (i32, i32) {
    %c0_i32 = arith.constant 0 : i32
    %c0_i32_0 = arith.constant 0 : i32
    %c0_i32_1 = arith.constant 0 : i32
    return %c0_i32, %c0_i32_0 : i32, i32
  }
  func.func @transform_7(%arg0: i32) -> (i32, i32) {
    %c0_i32 = arith.constant 0 : i32
    %c0_i32_0 = arith.constant 0 : i32
    %c0_i32_1 = arith.constant 0 : i32
    return %c0_i32, %c0_i32_0 : i32, i32
  }
  func.func @transform_8(%arg0: i32) -> (i32, i32) {
    %c0_i32 = arith.constant 0 : i32
    %c0_i32_0 = arith.constant 0 : i32
    %c0_i32_1 = arith.constant 0 : i32
    return %c0_i32, %c0_i32_0 : i32, i32
  }
  func.func @transform_9(%arg0: i32) -> (i32, i32) {
    %c0_i32 = arith.constant 0 : i32
    %c0_i32_0 = arith.constant 0 : i32
    %c0_i32_1 = arith.constant 0 : i32
    return %c0_i32, %c0_i32_0 : i32, i32
  }
  func.func @transform_10(%arg0: i32) -> (i32, i32) {
    %c0_i32 = arith.constant 0 : i32
    %c0_i32_0 = arith.constant 0 : i32
    %c0_i32_1 = arith.constant 0 : i32
    return %c0_i32, %c0_i32_0 : i32, i32
  }
  func.func @transform_11(%arg0: i32) -> (i32, i32) {
    %c0_i32 = arith.constant 0 : i32
    %c0_i32_0 = arith.constant 0 : i32
    %c0_i32_1 = arith.constant 0 : i32
    return %c0_i32, %c0_i32_0 : i32, i32
  }
  func.func @transform_12(%arg0: i32) -> (i32, i32, i32) {
    %c0_i32 = arith.constant 0 : i32
    %c0_i32_0 = arith.constant 0 : i32
    %c0_i32_1 = arith.constant 0 : i32
    return %arg0, %c0_i32, %c0_i32_0 : i32, i32, i32
  }
}

</mosaic_0001>

<bundles_post_ra>
// kernel: tpu_custom_call.1
= control target key start
LH: loop header
LB: loop body
LE: loop exit
PB: predicated region body
PF: predicated region fallthrough
CT: control target
= control target key end

     0   :  { %s1947_s0 = inlined_call_operand.vmem [shape: f32[2,16,32], index: 0, kind: input, shape index: {}]   ;;  %s1948_s1 = inlined_call_operand.hbm [shape: f32[1,32], index: 1, kind: input, shape index: {}]   ;;  %s1949_s2 = inlined_call_operand.vmem [shape: f32[1,32], index: 2, kind: input, shape index: {}]   ;;  %s1950_s3 = inlined_call_operand.vmem [shape: bf16[32,96], index: 3, kind: input, shape index: {}]   ;;  %s1951_s4 = inlined_call_operand.vmem [shape: bf16[32,32], index: 4, kind: input, shape index: {}]   ;;  %s1952_s5 = inlined_call_operand.vmem [shape: f32[1,32], index: 5, kind: input, shape index: {}]   ;;  %s1953_s6 = inlined_call_operand.vmem [shape: f32[1,32], index: 6, kind: input, shape index: {}]   ;;  %s1954_s7 = inlined_call_operand.vmem [shape: f32[1,32], index: 7, kind: input, shape index: {}]   ;;  %s1955_s8 = inlined_call_operand.vmem [shape: bf16[32,128], index: 8, kind: input, shape index: {}]   ;;  %s1956_s9 = inlined_call_operand.vmem [shape: f32[1,128], index: 9, kind: input, shape index: {}]   ;;  %s1957_s10 = inlined_call_operand.vmem [shape: bf16[128,32], index: 10, kind: input, shape index: {}]   ;;  %s1958_s11 = inlined_call_operand.vmem [shape: f32[1,32], index: 11, kind: input, shape index: {}]   ;;  %s1959_s12 = inlined_call_operand.hbm [shape: f32[2,16,32], index: 12, kind: output, shape index: {}]  }
   0x1   :  { %1961 = sst [smem:[#allocation8_spill]] %s1947_s0 }
   0x2   :  { %1962 = sst [smem:[#allocation9_spill]] %s1948_s1 }
   0x3   :  { %17 = vsyncpa [#allocation3], 0 }
   0x4   :  { %18 = vsyncpa [#allocation4], 0 }
   0x5   :  { %20 = vsyncpa [#allocation4 + $0x1], 0  ;;  %s1683_s21 = smov 0   ;;  %s1685_s22 = smov 0  }
   0x6   :  { %s1687_s23 = smov 0   ;;  %s1689_s24 = smov 0  }
   0x7 LB: > { %s1704_s25 = sadd.s32 4294967295, %s1599_s24   ;;  %s1270_s26 = sadd.s32 4294967294, %s1599_s24   ;;  %s1599_s24 = sphi %s1689_s24, %s1971_s24   ;;  %s1595_s23 = sphi %s1687_s23, %s1970_s23   ;;  %s1591_s22 = sphi %s1685_s22, %s1969_s22   ;;  %s1587_s21 = sphi %s1683_s21, %s1968_s21  }
   0x8   : > { %s1708_s27 = sadd.s32 1, %s1599_s24   ;;  %s290_s28 = sadd.s32 1, %s1595_s23 }
   0x9   : > { %s287_s29 = ssub.s32 %s1599_s24, %s1708_s27  ;;  %p300_p0 = scmp.ne.s32.totalorder %s1595_s23, %s1591_s22 }
   0xa   : > { %p288_p1 = scmp.eq.s32.totalorder %s287_s29, 0  ;;  %p301_p2 = scmp.eq.s32.totalorder %s1704_s25, 1 }
   0xb   : > { %p306_p3 = scmp.ne.s32.totalorder %s1591_s22, %s1587_s21  ;;  %p307_p4 = scmp.eq.s32.totalorder %s1270_s26, 1 }
   0xc   : > { %s1719_s30 = scalar_select %p288_p1, %s1595_s23, %s290_s28  }
   0xd   : > { %p1721_p5 = por %p301_p2, %p300_p0  ;;  %p1725_p6 = por %p307_p4, %p306_p3 }
   0xe   : > { %p1271_p7 = scmp.ge.s32.totalorder %s1599_s24, 1  ;;  %p314_p8 = scmp.lt.s32.totalorder %s1599_s24, 3 }
   0xf   : > { %p1383_p9 = scmp.eq.s32.totalorder %s1704_s25, 0  ;;  %s1965_s1 = sld [smem:[#allocation9_spill]] }
  0x10   : > { %p315_p10 = pnand %p1271_p7, %p314_p8  ;;  %s1601_s18 = smov [#allocation2]  }
  0x11   : > { %s328_s19 = sshll.u32 %s1601_s18, 4  ;;  %s329_s19 = int_to_ptr.vmem [resolvable:$true] %s328_s19 }
  0x12   : > { %p1375_p11 = pneg %p315_p10  ;;  %379 = sbr.rel (%p315_p10) target bundleno = 2399 (0x95f), region = 68 }
  0x14   : > { %p1376_p12 = pnand %p1383_p9, %p1375_p11 }
  0x15   : > { %s326_s17 = sshll.u32 %s1965_s1, 4  ;;  %s327_s17 = int_to_ptr.hbm [resolvable:$true] %s326_s17 }
  0x16   : > { %1378 = dma.hbm_to_vmem [thread:$0]  (!%p1376_p12), %s327_s17, 16, %s329_s19, [#allocation3]  }
  0x17   : > { %1578 = dma.done.wait (%p1383_p9), [#allocation3], 16  }
  0x18   : > { %1580 = vsyncadd (%p1383_p9), [#allocation3], 4294967280  ;;  %p422_p13 = scmp.lt.s32.totalorder %s1704_s25, 1  ;;  %s1966_s0 = sld [smem:[#allocation8_spill]]  ;;  %vm430_vm0 = vcmask 261120   ;;  %v1602_v4 = vmov 32.0  }
  0x19   : > { %1457 = vrcp.f32 %v1602_v4  ;;  %v1355_v21 = vld [vmem:[%s1950_s3 + $0x8] sm:$0xff]  ;;  %v1354_v23 = vld [vmem:[%s1950_s3] sm:$0xff]  ;;  %s1603_s28 = smov 64   ;;  %s1604_s29 = smov 96   ;;  %vm546_vm8 = vcmask 64512   ;;  %vm567_vm9 = vcmask 130048  }
  0x1a   : > { %s423_s20 = scalar_select %p422_p13, %s1704_s25, 1  ;;  %520 = vmatpush.bf16.msra.mxu0 %v1355_v21  ;;  %v1450_v42 = vld [vmem:[#allocation2] ss:$0 sm:$0xff]  ;;  %vm864_vm10 = vcmask 195584  }
  0x1b   : > { %v1451_v47 = vld [vmem:[%s1949_s2] ss:$0 sm:$0xff]  ;;  %s1606_s16 = smov 120   ;;  %s1607_s17 = smov 88  }
  0x1c   : > { %s1353_s26 = sshll.u32 %s423_s20, 4  ;;  %s1608_s18 = smov 80  }
  0x1d   : > { %s1609_s19 = smov 104   ;;  %s1610_s20 = smov 112  }
  0x1e   : > { %s426_s15 = scalar_lea.vmem %s1966_s0, %s1353_s26  ;;  %521 = vmatpush.bf16.msra.mxu0 %v1354_v23  ;;  %s1611_s26 = smov 56  }
  0x1f   : > { %v1740_v0 = vld [vmem:[%s426_s15] sm:$0xff]  ;;  %v1744_v2 = vld [vmem:[%s426_s15 + $0x8] sm:$0xff]  ;;  %v1458_v5 = vpop.eup %1457  ;;  %s1605_s15 = smov 72  }
  0x20   : > { %v431_v1 = vsel %vm430_vm0, %v1740_v0, 0.0  ;;  %v434_v3 = vsel %vm430_vm0, %v1744_v2, 0.0  ;;  %v438_v6 = vmul.f32 32.0, %v1458_v5  ;;  %vm442_vm1 = vweird.f32 %v1458_v5 }
  0x21   : > { %432 = vadd.xlane.f32.xlu0 %v431_v1 }
  0x22   : > { %v439_v7 = vsub.f32 1.0, %v438_v6 }
  0x24   : > { %v440_v8 = vmul.f32 %v1458_v5, %v439_v7 }
  0x26   : > { %v441_v9 = vadd.f32 %v1458_v5, %v440_v8 }
  0x28   : > { %v1748_v10 = vsel %vm442_vm1, %v1458_v5, %v441_v9 }
  0x29   : > { %435 = vadd.xlane.f32.xlu0 %v434_v3 }
  0x94   : > { %v433_v11 = vpop.xlane.xlu0 %432 }
  0x95   : > { %v444_v12 = vmul.f32 %v1748_v10, %v433_v11 }
  0x97   : > { %v446_v13 = vsub.f32 %v1740_v0, %v444_v12 }
  0x99   : > { %v448_v14 = vmul.f32 %v446_v13, %v446_v13 }
  0x9b   : > { %v450_v15 = vsel %vm430_vm0, %v448_v14, 0.0 }
  0x9c   : > { %451 = vadd.xlane.f32.xlu1 %v450_v15  ;;  %v436_v16 = vpop.xlane.xlu0 %435 }
  0x9d   : > { %v445_v17 = vmul.f32 %v1748_v10, %v436_v16 }
  0x9f   : > { %v447_v18 = vsub.f32 %v1744_v2, %v445_v17 }
  0xa1   : > { %v449_v19 = vmul.f32 %v447_v18, %v447_v18 }
  0xa3   : > { %v453_v20 = vsel %vm430_vm0, %v449_v19, 0.0 }
  0xa4   : > { %454 = vadd.xlane.f32.xlu1 %v453_v20 }
 0x10f   : > { %v452_v22 = vpop.xlane.xlu1 %451 }
 0x110   : > { %v456_v24 = vmul.f32 %v452_v22, %v1748_v10 }
 0x112   : > { %v458_v25 = vadd.f32 1e-05, %v456_v24 }
 0x114   : > { %1459 = vrsqrt.f32 %v458_v25  ;;  %vm466_vm3 = vweird.f32 %v458_v25 }
 0x117   : > { %v455_v26 = vpop.xlane.xlu1 %454 }
 0x118   : > { %v457_v27 = vmul.f32 %v455_v26, %v1748_v10 }
 0x11a   : > { %v1460_v28 = vpop.eup %1459  ;;  %v459_v29 = vadd.f32 1e-05, %v457_v27 }
 0x11b   : > { %v461_v30 = vmul.f32 %v1460_v28, %v458_v25  ;;  %vm467_vm2 = vweird.f32 %v1460_v28 }
 0x11c   : > { %1461 = vrsqrt.f32 %v459_v29  ;;  %vm468_vm4 = vmor %vm466_vm3, %vm467_vm2  ;;  %vm476_vm6 = vweird.f32 %v459_v29 }
 0x11d   : > { %v462_v31 = vmul.f32 %v1460_v28, %v461_v30 }
 0x11f   : > { %v463_v32 = vmul.f32 0.5, %v462_v31 }
 0x121   : > { %v464_v33 = vsub.f32 1.5, %v463_v32 }
 0x122   : > { %v1462_v34 = vpop.eup %1461 }
 0x123   : > { %v465_v35 = vmul.f32 %v1460_v28, %v464_v33  ;;  %v471_v36 = vmul.f32 %v1462_v34, %v459_v29  ;;  %vm477_vm5 = vweird.f32 %v1462_v34 }
 0x124   : > { %vm478_vm7 = vmor %vm476_vm6, %vm477_vm5 }
 0x125   : > { %v472_v37 = vmul.f32 %v1462_v34, %v471_v36  ;;  %v469_v38 = vsel %vm468_vm4, %v1460_v28, %v465_v35 }
 0x126   : > { %v480_v41 = vmul.f32 %v469_v38, %v446_v13 }
 0x127   : > { %v473_v39 = vmul.f32 0.5, %v472_v37 }
 0x128   : > { %v486_v46 = vmul.f32 %v1450_v42, %v480_v41 }
 0x129   : > { %v474_v40 = vsub.f32 1.5, %v473_v39 }
 0x12a   : > { %v492_v49 = vadd.f32 %v1451_v47, %v486_v46 }
 0x12b   : > { %v475_v43 = vmul.f32 %v1462_v34, %v474_v40 }
 0x12d   : > { %v479_v44 = vsel %vm478_vm7, %v1462_v34, %v475_v43 }
 0x12e   : > { %v481_v45 = vmul.f32 %v479_v44, %v447_v18 }
 0x130   : > { %v487_v48 = vmul.f32 %v1450_v42, %v481_v45 }
 0x132   : > { %v493_v50 = vadd.f32 %v1451_v47, %v487_v48 }
 0x134   : > { %v498_v51 = vpack.c.bf16 %v493_v50, %v492_v49 }
 0x136   : > { %1287 = vmatmul.msk.bf16.vlgmr.msra.gmra.mxu0 %vm430_vm0, %v498_v51 }
 0x1b3   : > { %v523_v52 = vpop.f32.mrf.mxu0 }
 0x1b4   : > { %v532_v53 = vpack.c.bf16 %v523_v52, %v523_v52  ;;  %v528_v60 = vmul.f32 0.35355338, %v523_v52 }
 0x1b6   : > { %v541_v56 = vunpack.c.l.b16 %v532_v53  ;;  %v530_v63 = vpack.c.bf16 %v528_v60, %v528_v60 }
 0x1b8   : > { %v536_v4 = vunpack.c.l.b16 %v530_v63 }
 0x1bb   : > { %v525_v54 = vpop.f32.mrf.mxu0 }
 0x1bc   : > { %v533_v55 = vpack.c.bf16 %v525_v54, %v525_v54  ;;  %v529_v59 = vmul.f32 0.35355338, %v525_v54 }
 0x1be   : > { %v542_v57 = vunpack.c.l.b16 %v533_v55  ;;  %v531_v61 = vpack.c.bf16 %v529_v59, %v529_v59 }
 0x1c0   : > { %v1768_v58 = vpack.c.b16 %v542_v57, %v541_v56  ;;  %v537_v3 = vunpack.c.l.b16 %v531_v61 }
 0x1c2   : > { %597 = vrot.lane.b32.xlu1 %v1768_v58, %s1603_s28  ;;  %544 = vrot.lane.b32.xlu2 %v1768_v58, %s1604_s29  ;;  %v538_v5 = vpack.c.b16 %v537_v3, %v536_v4  ;;  %s1612_s28 = smov 48   ;;  %s1613_s29 = smov 40  }
 0x21c   : > { %v545_v62 = vpop.permute.xlu2 %544 }
 0x21d   : > { %v551_v1 = vsel %vm546_vm8, %v545_v62, 0 }
 0x21e   : > { %560 = vmatpush.bf16.xpose.msra.mxu1 %v551_v1 }
 0x225   : > { %1288 = vmatmul.msk.bf16.vlgmr.msra.gmra.mxu1 %vm546_vm8, %v538_v5 }
 0x234   : > { %v598_v6 = vpop.permute.xlu1 %597 }
 0x235   : > { %610 = vmatpush.bf16.msra.mxu2 %v598_v6 }
 0x2a2   : > { %v562_v7 = vpop.f32.mrf.mxu1 }
 0x2a3   : > { %v568_v8 = vsel %vm567_vm9, %v562_v7, -inf }
 0x2a4   : > { %569 = vmax.xlane.f32.xlu2 %v568_v8 }
 0x2aa   : > { %v564_v9 = vpop.f32.mrf.mxu1 }
 0x2ab   : > { %v571_v11 = vsel %vm567_vm9, %v564_v9, -inf }
 0x2ac   : > { %572 = vmax.xlane.f32.xlu0 %v571_v11 }
 0x2bc   : > { %765 = vrot.lane.b32.xlu2 %v1768_v58, %s1605_s15  ;;  %s1960_s15 = smov 8  }
 0x317   : > { %v570_v12 = vpop.xlane.xlu2 %569 }
 0x318   : > { %v574_v13 = vsub.f32 %v562_v7, %v570_v12 }
 0x31a   : > { %v576_v14 = vmul.f32 1.442695, %v574_v13 }
 0x31c   : > { %1463 = vpow2.f32 %v576_v14 }
 0x31f   : > { %v766_v15 = vpop.permute.xlu2 %765  ;;  %v573_v16 = vpop.xlane.xlu0 %572 }
 0x320   : > { %v575_v17 = vsub.f32 %v564_v9, %v573_v16  ;;  %v771_v18 = vsel %vm546_vm8, %v766_v15, 0 }
 0x321   : > { %780 = vmatpush.bf16.xpose.msra.mxu3 %v771_v18 }
 0x322   : > { %v1464_v19 = vpop.eup %1463  ;;  %v578_v20 = vmul.f32 1.442695, %v575_v17 }
 0x323   : > { %v580_v21 = vsel %vm567_vm9, %v1464_v19, 0.0 }
 0x324   : > { %1465 = vpow2.f32 %v578_v20  ;;  %581 = vadd.xlane.f32.xlu1 %v580_v21 }
 0x32a   : > { %v1466_v22 = vpop.eup %1465 }
 0x32b   : > { %v583_v23 = vsel %vm567_vm9, %v1466_v22, 0.0 }
 0x32c   : > { %584 = vadd.xlane.f32.xlu0 %v583_v23 }
 0x33d   : > { %617 = vrot.lane.b32.xlu1 %v538_v5, %s1606_s16  ;;  %s1615_s16 = smov 16  }
 0x340   : > { %619 = vrot.lane.b32.xlu0 %v1768_v58, %s1607_s17  ;;  %s1616_s17 = smov 24  }
 0x345   : > { %692 = vrot.lane.b32.xlu1 %v1768_v58, %s1608_s18  ;;  %s419_s18 = sand.u32 1, %s1591_s22  }
 0x348   : > { %763 = vrot.lane.b32.xlu0 %v538_v5, %s1609_s19  ;;  %s1276_s19 = sshll.u32 %s419_s18, 4 }
 0x350   : > { %690 = vrot.lane.b32.xlu0 %v538_v5, %s1610_s20 }
 0x397   : > { %v582_v24 = vpop.xlane.xlu1 %581 }
 0x398   : > { %1467 = vrcp.f32 %v582_v24 }
 0x39e   : > { %v1468_v26 = vpop.eup %1467 }
 0x39f   : > { %v585_v25 = vpop.xlane.xlu0 %584  ;;  %v588_v27 = vmul.f32 %v1468_v26, %v1464_v19 }
 0x3a0   : > { %1469 = vrcp.f32 %v585_v25 }
 0x3a1   : > { %v590_v30 = vpack.c.bf16 %v588_v27, %v588_v27 }
 0x3a3   : > { %v594_v32 = vunpack.c.l.b16 %v590_v30 }
 0x3a6   : > { %v1470_v28 = vpop.eup %1469 }
 0x3a7   : > { %v589_v29 = vmul.f32 %v1470_v28, %v1466_v22 }
 0x3a9   : > { %v591_v31 = vpack.c.bf16 %v589_v29, %v589_v29 }
 0x3ab   : > { %v595_v33 = vunpack.c.l.b16 %v591_v31 }
 0x3ad   : > { %v596_v34 = vpack.c.b16 %v595_v33, %v594_v32 }
 0x3af   : > { %v618_v35 = vpop.permute.xlu1 %617  ;;  %1289 = vmatmul.msk.bf16.vlgmr.msra.gmra.mxu2 %vm567_vm9, %v596_v34 }
 0x3b2   : > { %v620_v36 = vpop.permute.xlu0 %619 }
 0x3b3   : > { %v625_v37 = vsel %vm546_vm8, %v620_v36, 0 }
 0x3b4   : > { %634 = vmatpush.bf16.xpose.msrb.mxu2 %v625_v37 }
 0x3b7   : > { %v693_v38 = vpop.permute.xlu1 %692 }
 0x3b8   : > { %v698_v39 = vsel %vm546_vm8, %v693_v38, 0 }
 0x3b9   : > { %707 = vmatpush.bf16.xpose.msrb.mxu0 %v698_v39 }
 0x3ba   : > { %v764_v40 = vpop.permute.xlu0 %763 }
 0x3bb   : > { %1294 = vmatmul.msk.bf16.vlgmr.msra.gmra.mxu3 %vm546_vm8, %v764_v40 }
 0x3bf   : > { %1290 = vmatmul.msk.bf16.vlgmr.msrb.gmra.mxu2 %vm546_vm8, %v618_v35 }
 0x3c2   : > { %v691_v41 = vpop.permute.xlu0 %690 }
 0x3c3   : > { %1292 = vmatmul.msk.bf16.vlgmr.msrb.gmra.mxu0 %vm546_vm8, %v691_v41 }
 0x432   : > { %v1788_v42 = vpop.f32.mrf.mxu2 }
 0x43a   : > { %v1790_v43 = vpop.f32.mrf.mxu2 }
 0x43e   : > { %v782_v44 = vpop.f32.mrf.mxu3 }
 0x43f   : > { %v787_v45 = vsel %vm567_vm9, %v782_v44, -inf }
 0x440   : > { %788 = vmax.xlane.f32.xlu2 %v787_v45  ;;  %v709_v46 = vpop.f32.mrf.mxu0 }
 0x441   : > { %v714_v55 = vsel %vm567_vm9, %v709_v46, -inf }
 0x442   : > { %v636_v47 = vpop.f32.mrf.mxu2 }
 0x443   : > { %v641_v48 = vsel %vm567_vm9, %v636_v47, -inf }
 0x444   : > { %642 = vmax.xlane.f32.xlu1 %v641_v48 }
 0x446   : > { %v784_v49 = vpop.f32.mrf.mxu3 }
 0x447   : > { %v790_v54 = vsel %vm567_vm9, %v784_v49, -inf }
 0x448   : > { %v711_v50 = vpop.f32.mrf.mxu0 }
 0x449   : > { %v717_v51 = vsel %vm567_vm9, %v711_v50, -inf }
 0x44a   : > { %v638_v52 = vpop.f32.mrf.mxu2  ;;  %718 = vmax.xlane.f32.xlu2 %v717_v51 }
 0x44b   : > { %v644_v53 = vsel %vm567_vm9, %v638_v52, -inf }
 0x44c   : > { %645 = vmax.xlane.f32.xlu0 %v644_v53  ;;  %791 = vmax.xlane.f32.xlu1 %v790_v54 }
 0x454   : > { %715 = vmax.xlane.f32.xlu0 %v714_v55 }
 0x462   : > { %670 = vrot.lane.b32.xlu2 %v1768_v58, %s1611_s26 }
 0x4b3   : > { %v789_v56 = vpop.xlane.xlu2 %788 }
 0x4b4   : > { %v793_v57 = vsub.f32 %v782_v44, %v789_v56 }
 0x4b6   : > { %v795_v59 = vmul.f32 1.442695, %v793_v57 }
 0x4b7   : > { %v643_v60 = vpop.xlane.xlu1 %642 }
 0x4b8   : > { %1471 = vpow2.f32 %v795_v59  ;;  %v647_v12 = vsub.f32 %v636_v47, %v643_v60 }
 0x4ba   : > { %v649_v17 = vmul.f32 1.442695, %v647_v12  ;;  %v1357_v12 = vld [vmem:[%s1951_s4 + $0x8] sm:$0xff] }
 0x4bb   : > { %893 = vmatpush.bf16.msra.mxu0 %v1357_v12 }
 0x4bd   : > { %v719_v61 = vpop.xlane.xlu2 %718 }
 0x4be   : > { %v1799_v62 = vpop.eup %1471  ;;  %v721_v5 = vsub.f32 %v711_v50, %v719_v61 }
 0x4bf   : > { %v792_v63 = vpop.xlane.xlu1 %791  ;;  %v646_v1 = vpop.xlane.xlu0 %645  ;;  %v799_v3 = vsel %vm567_vm9, %v1799_v62, 0.0 }
 0x4c0   : > { %v794_v4 = vsub.f32 %v784_v49, %v792_v63  ;;  %800 = vadd.xlane.f32.xlu1 %v799_v3  ;;  %v724_v8 = vmul.f32 1.442695, %v721_v5  ;;  %v648_v14 = vsub.f32 %v638_v52, %v646_v1 }
 0x4c2   : > { %v797_v6 = vmul.f32 1.442695, %v794_v4  ;;  %v651_v18 = vmul.f32 1.442695, %v648_v14 }
 0x4c4   : > { %1473 = vpow2.f32 %v797_v6 }
 0x4c5   : > { %v671_v7 = vpop.permute.xlu2 %670  ;;  %1475 = vpow2.f32 %v724_v8 }
 0x4c6   : > { %683 = vmatpush.bf16.msra.mxu2 %v671_v7 }
 0x4c7   : > { %v716_v9 = vpop.xlane.xlu0 %715 }
 0x4c8   : > { %v720_v11 = vsub.f32 %v709_v46, %v716_v9 }
 0x4ca   : > { %v1474_v13 = vpop.eup %1473  ;;  %v722_v15 = vmul.f32 1.442695, %v720_v11 }
 0x4cb   : > { %v802_v16 = vsel %vm567_vm9, %v1474_v13, 0.0  ;;  %v1476_v19 = vpop.eup %1475 }
 0x4cc   : > { %1477 = vpow2.f32 %v722_v15  ;;  %803 = vadd.xlane.f32.xlu0 %v802_v16  ;;  %v729_v21 = vsel %vm567_vm9, %v1476_v19, 0.0 }
 0x4cd   : > { %1479 = vpow2.f32 %v649_v17 }
 0x4ce   : > { %1481 = vpow2.f32 %v651_v18 }
 0x4d2   : > { %v1478_v20 = vpop.eup %1477 }
 0x4d3   : > { %v726_v22 = vsel %vm567_vm9, %v1478_v20, 0.0  ;;  %v1480_v23 = vpop.eup %1479 }
 0x4d4   : > { %730 = vadd.xlane.f32.xlu0 %v729_v21  ;;  %727 = vadd.xlane.f32.xlu1 %v726_v22  ;;  %v1482_v24 = vpop.eup %1481  ;;  %v653_v26 = vsel %vm567_vm9, %v1480_v23, 0.0 }
 0x4d5   : > { %v656_v25 = vsel %vm567_vm9, %v1482_v24, 0.0 }
 0x4dc   : > { %657 = vadd.xlane.f32.xlu0 %v656_v25  ;;  %654 = vadd.xlane.f32.xlu1 %v653_v26 }
 0x4f0   : > { %743 = vrot.lane.b32.xlu0 %v1768_v58, %s1612_s28  ;;  %s1368_s28 = sshll.u32 %s1704_s25, 4  ;;  %s1181_s25 = scalar_lea.sflag [#allocation4], %s419_s18 }
 0x4f5   : > { %816 = vrot.lane.b32.xlu1 %v1768_v58, %s1613_s29  ;;  %s421_s29 = scalar_lea.vmem [#allocation5], %s1276_s19 }
 0x4f6   : > { %s1193_s0 = sshll.u32 %s421_s29, 4  ;;  %s1194_s0 = int_to_ptr.vmem [resolvable:$true] %s1193_s0 }
 0x533   : > { %v801_v27 = vpop.xlane.xlu1 %800 }
 0x53f   : > { %v804_v28 = vpop.xlane.xlu0 %803 }
 0x547   : > { %v728_v29 = vpop.xlane.xlu1 %727  ;;  %v731_v30 = vpop.xlane.xlu0 %730 }
 0x548   : > { %1483 = vrcp.f32 %v728_v29 }
 0x549   : > { %1485 = vrcp.f32 %v731_v30  ;;  %v1452_v30 = vld [vmem:[%s1952_s5] ss:$0 sm:$0xff] }
 0x54e   : > { %v1484_v33 = vpop.eup %1483 }
 0x54f   : > { %v655_v31 = vpop.xlane.xlu1 %654  ;;  %v658_v32 = vpop.xlane.xlu0 %657  ;;  %v734_v38 = vmul.f32 %v1484_v33, %v1478_v20 }
 0x550   : > { %1487 = vrcp.f32 %v655_v31  ;;  %v1486_v34 = vpop.eup %1485 }
 0x551   : > { %1489 = vrcp.f32 %v658_v32  ;;  %v735_v39 = vmul.f32 %v1486_v34, %v1476_v19  ;;  %v736_v45 = vpack.c.bf16 %v734_v38, %v734_v38 }
 0x552   : > { %1491 = vrcp.f32 %v804_v28 }
 0x553   : > { %1493 = vrcp.f32 %v801_v27  ;;  %v737_v46 = vpack.c.bf16 %v735_v39, %v735_v39  ;;  %v740_v50 = vunpack.c.l.b16 %v736_v45 }
 0x555   : > { %v741_v51 = vunpack.c.l.b16 %v737_v46  ;;  %v1359_v46 = vld [vmem:[%s1955_s8 + $0x8] sm:$0xff] }
 0x556   : > { %v1488_v35 = vpop.eup %1487 }
 0x557   : > { %v1490_v36 = vpop.eup %1489  ;;  %v661_v37 = vmul.f32 %v1488_v35, %v1480_v23  ;;  %v742_v56 = vpack.c.b16 %v741_v51, %v740_v50 }
 0x558   : > { %v662_v40 = vmul.f32 %v1490_v36, %v1482_v24  ;;  %v1492_v49 = vpop.eup %1491 }
 0x559   : > { %v663_v58 = vpack.c.bf16 %v661_v37, %v661_v37  ;;  %v1494_v52 = vpop.eup %1493  ;;  %v808_v53 = vmul.f32 %v1492_v49, %v1474_v13  ;;  %v1356_v13 = vld [vmem:[%s1951_s4] sm:$0xff] }
 0x55a   : > { %v664_v41 = vpack.c.bf16 %v662_v40, %v662_v40  ;;  %v807_v55 = vmul.f32 %v1494_v52, %v1799_v62  ;;  %894 = vmatpush.bf16.msra.mxu0 %v1356_v13  ;;  %v1358_v49 = vld [vmem:[%s1955_s8] sm:$0xff] }
 0x55b   : > { %v667_v44 = vunpack.c.l.b16 %v663_v58  ;;  %v810_v57 = vpack.c.bf16 %v808_v53, %v808_v53 }
 0x55c   : > { %v668_v47 = vunpack.c.l.b16 %v664_v41  ;;  %v809_v60 = vpack.c.bf16 %v807_v55, %v807_v55 }
 0x55d   : > { %v814_v61 = vunpack.c.l.b16 %v810_v57 }
 0x55e   : > { %v669_v48 = vpack.c.b16 %v668_v47, %v667_v44  ;;  %v813_v63 = vunpack.c.l.b16 %v809_v60 }
 0x560   : > { %1291 = vmatmul.msk.bf16.vlgmr.msra.gmra.mxu2 %vm567_vm9, %v669_v48  ;;  %v815_v1 = vpack.c.b16 %v814_v61, %v813_v63 }
 0x562   : > { %v744_v54 = vpop.permute.xlu0 %743 }
 0x563   : > { %756 = vmatpush.bf16.msrb.mxu1 %v744_v54 }
 0x566   : > { %1293 = vmatmul.msk.bf16.vlgmr.msrb.gmra.mxu1 %vm567_vm9, %v742_v56 }
 0x567   : > { %v817_v59 = vpop.permute.xlu1 %816  ;;  %995 = vmatpush.bf16.msra.mxu1 %v1359_v46  ;;  %v1362_v46 = vld [vmem:[%s1957_s10 + $0x10] sm:$0xff] }
 0x568   : > { %829 = vmatpush.bf16.msrb.mxu2 %v817_v59 }
 0x56b   : > { %996 = vmatpush.bf16.msra.mxu1 %v1358_v49 }
 0x570   : > { %1295 = vmatmul.msk.bf16.vlgmr.msrb.gmra.mxu2 %vm567_vm9, %v815_v1 }
 0x5e3   : > { %v685_v3 = vpop.f32.mrf.mxu2  ;;  %v758_v4 = vpop.f32.mrf.mxu1 }
 0x5eb   : > { %v687_v5 = vpop.f32.mrf.mxu2  ;;  %v760_v62 = vpop.f32.mrf.mxu1 }
 0x5ec   : > { %v1435_v6 = vpack.i.bf16 %v687_v5, %v685_v3  ;;  %v1440_v8 = vpack.i.bf16 %v760_v62, %v758_v4 }
 0x5ee   : > { %1436 = vrot.lane.b32.xlu2 %v1435_v6, %s1960_s15  ;;  %s1192_s15 = scalar_lea.hbm %s1959_s12, %s1368_s28 }
 0x5ef   : > { %s1195_s1 = sshll.u32 %s1192_s15, 4  ;;  %s1196_s1 = int_to_ptr.hbm [resolvable:$true] %s1195_s1 }
 0x5f0   : > { %s1547_s20 = sshra.s32 %s1196_s1, 4  ;;  %s1548_s20 = int_to_ptr.hbm [resolvable:$true] %s1547_s20 }
 0x5f1   : > { %s1549_s19 = scalar_lea.hbm %s1548_s20, 16  ;;  %p1554_p3 = scmp.lt.s32.totalorder %s1548_s20, %s1959_s12 }
 0x5f2   : > { %p1550_p0 = scmp.ne.s32.totalorder %s1548_s20, %s1549_s19 }
 0x5f3   : > { %v831_v7 = vpop.f32.mrf.mxu2 }
 0x5f4   : > { %p1551_p1 = pnand %p1550_p0, %p1721_p5 }
 0x5f6   : > { %1441 = vrot.lane.b32.xlu2 %v1440_v8, %s1615_s16  ;;  %v1454_v8 = vld [vmem:[%s1954_s7] ss:$0 sm:$0xff]  ;;  %p1552_p2 = pneg %p1551_p1  ;;  %s1553_s16 = scalar_lea.hbm %s1959_s12, 32 }
 0x5f7   : > { %p1555_p4 = scmp.lt.s32.totalorder %s1553_s16, %s1549_s19 }
 0x5f9   : > { %p1556_p7 = por %p1555_p4, %p1554_p3 }
 0x5fb   : > { %v833_v9 = vpop.f32.mrf.mxu2  ;;  %p1557_p8 = pnand %p1556_p7, %p1552_p2 }
 0x5fc   : > { %v1445_v11 = vpack.i.bf16 %v833_v9, %v831_v7 }
 0x5fe   : > { %1446 = vrot.lane.b32.xlu0 %v1445_v11, %s1616_s17 }
 0x648   : > { %v1437_v14 = vpop.permute.xlu2 %1436 }
 0x649   : > { %v1439_v16 = vunpack.i.h.bf16 %v1437_v14  ;;  %v1438_v17 = vunpack.i.l.bf16 %v1437_v14 }
 0x64b   : > { %v861_v21 = vsel %vm546_vm8, %v1790_v43, %v1439_v16  ;;  %v860_v22 = vsel %vm546_vm8, %v1788_v42, %v1438_v17  ;;  %v1455_v16 = vld [vmem:[%s1956_s9] ss:$0 sm:$0xff] }
 0x650   : > { %v1442_v15 = vpop.permute.xlu2 %1441 }
 0x651   : > { %v1444_v18 = vunpack.i.h.bf16 %v1442_v15  ;;  %v1443_v19 = vunpack.i.l.bf16 %v1442_v15 }
 0x653   : > { %v863_v25 = vsel %vm567_vm9, %v861_v21, %v1444_v18  ;;  %v862_v26 = vsel %vm567_vm9, %v860_v22, %v1443_v19  ;;  %v1367_v19 = vld [vmem:[%s1957_s10 + $0x38] sm:$0xff]  ;;  %v1366_v22 = vld [vmem:[%s1957_s10 + $0x30] sm:$0xff] }
 0x654   : > { %1156 = vmatpush.bf16.msrb.mxu3 %v1367_v19 }
 0x658   : > { %1157 = vmatpush.bf16.msrb.mxu3 %v1366_v22 }
 0x670   : > { %v1447_v20 = vpop.permute.xlu0 %1446 }
 0x671   : > { %v1449_v23 = vunpack.i.h.bf16 %v1447_v20  ;;  %v1448_v24 = vunpack.i.l.bf16 %v1447_v20 }
 0x673   : > { %v866_v27 = vsel %vm864_vm10, %v863_v25, %v1449_v23  ;;  %v865_v28 = vsel %vm864_vm10, %v862_v26, %v1448_v24 }
 0x674   : > { %v871_v29 = vpack.c.bf16 %v866_v27, %v865_v28  ;;  %v1365_v28 = vld [vmem:[%s1957_s10 + $0x28] sm:$0xff] }
 0x675   : > { %1158 = vmatpush.bf16.msrb.mxu3 %v1365_v28 }
 0x676   : > { %1304 = vmatmul.msk.bf16.vlgmr.msra.gmra.mxu0 %vm430_vm0, %v871_v29 }
 0x6f3   : > { %v896_v31 = vpop.f32.mrf.mxu0 }
 0x6f4   : > { %v901_v43 = vadd.f32 %v896_v31, %v1740_v0 }
 0x6f6   : > { %v1832_v32 = vadd.f32 %v1452_v30, %v901_v43 }
 0x6f8   : > { %v909_v42 = vsel %vm430_vm0, %v1832_v32, 0.0 }
 0x6f9   : > { %910 = vadd.xlane.f32.xlu2 %v909_v42  ;;  %v1364_v42 = vld [vmem:[%s1957_s10 + $0x20] sm:$0xff] }
 0x6fa   : > { %1159 = vmatpush.bf16.msrb.mxu3 %v1364_v42 }
 0x6fb   : > { %v898_v33 = vpop.f32.mrf.mxu0 }
 0x6fc   : > { %v902_v34 = vadd.f32 %v898_v33, %v1744_v2 }
 0x6fe   : > { %v1837_v35 = vadd.f32 %v1452_v30, %v902_v34 }
 0x700   : > { %v912_v36 = vsel %vm430_vm0, %v1837_v35, 0.0 }
 0x701   : > { %913 = vadd.xlane.f32.xlu1 %v912_v36 }
 0x76c   : > { %v911_v37 = vpop.xlane.xlu2 %910 }
 0x76d   : > { %v915_v38 = vmul.f32 %v911_v37, %v1748_v10 }
 0x76f   : > { %v917_v0 = vsub.f32 %v1832_v32, %v915_v38 }
 0x771   : > { %v919_v39 = vmul.f32 %v917_v0, %v917_v0 }
 0x773   : > { %v921_v40 = vsel %vm430_vm0, %v919_v39, 0.0 }
 0x774   : > { %922 = vadd.xlane.f32.xlu0 %v921_v40  ;;  %v914_v58 = vpop.xlane.xlu1 %913 }
 0x775   : > { %v916_v41 = vmul.f32 %v914_v58, %v1748_v10 }
 0x777   : > { %v918_v2 = vsub.f32 %v1837_v35, %v916_v41 }
 0x779   : > { %v920_v44 = vmul.f32 %v918_v2, %v918_v2 }
 0x77b   : > { %v924_v45 = vsel %vm430_vm0, %v920_v44, 0.0 }
 0x77c   : > { %925 = vadd.xlane.f32.xlu2 %v924_v45 }
 0x7e7   : > { %v923_v47 = vpop.xlane.xlu0 %922 }
 0x7e8   : > { %v927_v48 = vmul.f32 %v923_v47, %v1748_v10 }
 0x7ea   : > { %v929_v50 = vadd.f32 1e-05, %v927_v48 }
 0x7ec   : > { %1495 = vrsqrt.f32 %v929_v50  ;;  %vm937_vm12 = vweird.f32 %v929_v50 }
 0x7ef   : > { %v926_v51 = vpop.xlane.xlu2 %925 }
 0x7f0   : > { %v928_v52 = vmul.f32 %v926_v51, %v1748_v10  ;;  %v1453_v10 = vld [vmem:[%s1953_s6] ss:$0 sm:$0xff] }
 0x7f2   : > { %v1496_v53 = vpop.eup %1495  ;;  %v930_v54 = vadd.f32 1e-05, %v928_v52 }
 0x7f3   : > { %v932_v55 = vmul.f32 %v1496_v53, %v929_v50  ;;  %vm938_vm11 = vweird.f32 %v1496_v53 }
 0x7f4   : > { %1497 = vrsqrt.f32 %v930_v54  ;;  %vm939_vm13 = vmor %vm937_vm12, %vm938_vm11  ;;  %vm947_vm15 = vweird.f32 %v930_v54 }
 0x7f5   : > { %v933_v56 = vmul.f32 %v1496_v53, %v932_v55 }
 0x7f7   : > { %v934_v57 = vmul.f32 0.5, %v933_v56 }
 0x7f9   : > { %v935_v59 = vsub.f32 1.5, %v934_v57 }
 0x7fa   : > { %v1498_v60 = vpop.eup %1497 }
 0x7fb   : > { %v936_v61 = vmul.f32 %v1496_v53, %v935_v59  ;;  %v942_v63 = vmul.f32 %v1498_v60, %v930_v54  ;;  %vm948_vm14 = vweird.f32 %v1498_v60  ;;  %v1361_v54 = vld [vmem:[%s1957_s10 + $0x8] sm:$0xff] }
 0x7fc   : > { %vm949_vm1 = vmor %vm947_vm15, %vm948_vm14 }
 0x7fd   : > { %v943_v1 = vmul.f32 %v1498_v60, %v942_v63  ;;  %v940_v3 = vsel %vm939_vm13, %v1496_v53, %v936_v61  ;;  %v1360_v61 = vld [vmem:[%s1957_s10] sm:$0xff] }
 0x7fe   : > { %v951_v6 = vmul.f32 %v940_v3, %v917_v0  ;;  %v1363_v0 = vld [vmem:[%s1957_s10 + $0x18] sm:$0xff] }
 0x7ff   : > { %v944_v4 = vmul.f32 0.5, %v943_v1  ;;  %1160 = vmatpush.bf16.msrb.mxu3 %v1363_v0 }
 0x800   : > { %v957_v9 = vmul.f32 %v1453_v10, %v951_v6 }
 0x801   : > { %v945_v5 = vsub.f32 1.5, %v944_v4 }
 0x802   : > { %v963_v13 = vadd.f32 %v1454_v8, %v957_v9 }
 0x803   : > { %v946_v62 = vmul.f32 %v1498_v60, %v945_v5  ;;  %1161 = vmatpush.bf16.msrb.mxu3 %v1362_v46 }
 0x805   : > { %v950_v7 = vsel %vm949_vm1, %v1498_v60, %v946_v62 }
 0x806   : > { %v952_v11 = vmul.f32 %v950_v7, %v918_v2 }
 0x807   : > { %1162 = vmatpush.bf16.msrb.mxu3 %v1361_v54 }
 0x808   : > { %v958_v12 = vmul.f32 %v1453_v10, %v952_v11 }
 0x80a   : > { %v964_v14 = vadd.f32 %v1454_v8, %v958_v12 }
 0x80b   : > { %1163 = vmatpush.bf16.msrb.mxu3 %v1360_v61 }
 0x80c   : > { %v969_v15 = vpack.c.bf16 %v964_v14, %v963_v13 }
 0x80e   : > { %1313 = vmatmul.msk.bf16.vlgmr.msra.gmra.mxu1 %vm430_vm0, %v969_v15 }
 0x88b   : > { %v998_v17 = vpop.f32.mrf.mxu1 }
 0x88c   : > { %v1865_v18 = vadd.f32 %v1455_v16, %v998_v17 }
 0x88e   : > { %v1871_v20 = vmul.f32 0.70710677, %v1865_v18 }
 0x890   : > { %v1007_v21 = vmul.f32 %v1871_v20, %v1871_v20 }
 0x892   : > { %v1008_v23 = vmin.f32 %v1007_v21, 16.0 }
 0x893   : > { %v1000_v24 = vpop.f32.mrf.mxu1 }
 0x894   : > { %v1009_v25 = vmul.f32 2.1237322e-06, %v1008_v23  ;;  %v1020_v26 = vmul.f32 3.8918573e-05, %v1008_v23  ;;  %v1878_v27 = vadd.f32 %v1455_v16, %v1000_v24 }
 0x896   : > { %v1010_v29 = vadd.f32 0.00028619796, %v1009_v25  ;;  %v1021_v30 = vadd.f32 0.001143296, %v1020_v26  ;;  %v1884_v31 = vmul.f32 0.70710677, %v1878_v27 }
 0x898   : > { %v1022_v43 = vmul.f32 %v1021_v30, %v1008_v23  ;;  %v1047_v33 = vmul.f32 %v1884_v31, %v1884_v31  ;;  %v1011_v34 = vmul.f32 %v1010_v29, %v1008_v23 }
 0x89a   : > { %v1023_v36 = vadd.f32 0.014752088, %v1022_v43  ;;  %v1048_v37 = vmin.f32 %v1047_v33, 16.0  ;;  %v1012_v58 = vadd.f32 0.0036580483, %v1011_v34 }
 0x89c   : > { %v1024_v38 = vmul.f32 %v1023_v36, %v1008_v23  ;;  %v1049_v39 = vmul.f32 2.1237322e-06, %v1048_v37  ;;  %v1060_v40 = vmul.f32 3.8918573e-05, %v1048_v37  ;;  %v1013_v49 = vmul.f32 %v1012_v58, %v1008_v23 }
 0x89e   : > { %v1025_v41 = vadd.f32 0.112945676, %v1024_v38  ;;  %v1050_v2 = vadd.f32 0.00028619796, %v1049_v39  ;;  %v1061_v44 = vadd.f32 0.001143296, %v1060_v40 }
 0x89f   : > { %v1014_v56 = vadd.f32 0.05243302, %v1013_v49 }
 0x8a0   : > { %v1026_v45 = vmul.f32 %v1025_v41, %v1008_v23  ;;  %v1051_v47 = vmul.f32 %v1050_v2, %v1048_v37  ;;  %v1062_v48 = vmul.f32 %v1061_v44, %v1048_v37  ;;  %v1003_v41 = vmul.f32 0.5, %v1865_v18 }
 0x8a1   : > { %v1015_v1 = vmul.f32 %v1014_v56, %v1008_v23  ;;  %v1004_v2 = vmul.f32 0.5, %v1878_v27 }
 0x8a2   : > { %v1027_v50 = vadd.f32 0.4994258, %v1026_v45  ;;  %v1052_v51 = vadd.f32 0.0036580483, %v1051_v47  ;;  %v1063_v52 = vadd.f32 0.014752088, %v1062_v48 }
 0x8a3   : > { %v1016_v6 = vadd.f32 0.18741608, %v1015_v1 }
 0x8a4   : > { %v1028_v53 = vmul.f32 %v1027_v50, %v1008_v23  ;;  %v1064_v55 = vmul.f32 %v1063_v52, %v1048_v37  ;;  %v1053_v59 = vmul.f32 %v1052_v51, %v1048_v37 }
 0x8a5   : > { %v1017_v11 = vmul.f32 %v1016_v6, %v1008_v23 }
 0x8a6   : > { %v1029_v57 = vadd.f32 1.0, %v1028_v53  ;;  %v1065_v60 = vadd.f32 0.112945676, %v1064_v55  ;;  %v1054_v3 = vadd.f32 0.05243302, %v1053_v59 }
 0x8a7   : > { %v1018_v17 = vadd.f32 1.1283791, %v1017_v11 }
 0x8a8   : > { %1499 = vrcp.f32 %v1029_v57  ;;  %v1066_v63 = vmul.f32 %v1065_v60, %v1048_v37  ;;  %v1055_v7 = vmul.f32 %v1054_v3, %v1048_v37  ;;  %v1041_v13 = vand.u32 2147483648, %v1029_v57 }
 0x8a9   : > { %v1039_v15 = vand.u32 2147483647, %v1029_v57  ;;  %vm1035_vm3 = vweird.f32 %v1029_v57  ;;  %v1019_v28 = vmul.f32 %v1018_v17, %v1871_v20 }
 0x8aa   : > { %v1067_v4 = vadd.f32 0.4994258, %v1066_v63  ;;  %v1056_v14 = vadd.f32 0.18741608, %v1055_v7  ;;  %v1042_v22 = vor.u32 1.1754944e-38, %v1041_v13 }
 0x8ab   : > { %vm1040_vm5 = vcmp.eq.f32.partialorder %v1039_v15, 8.507059e+37 }
 0x8ac   : > { %v1068_v5 = vmul.f32 %v1067_v4, %v1048_v37  ;;  %v1057_v24 = vmul.f32 %v1056_v14, %v1048_v37 }
 0x8ae   : > { %v1500_v10 = vpop.eup %1499  ;;  %v1069_v8 = vadd.f32 1.0, %v1068_v5  ;;  %v1058_v23 = vadd.f32 1.1283791, %v1057_v24 }
 0x8af   : > { %v1031_v62 = vmul.f32 %v1500_v10, %v1029_v57  ;;  %vm1036_vm2 = vweird.f32 %v1500_v10 }
 0x8b0   : > { %1501 = vrcp.f32 %v1069_v8  ;;  %vm1037_vm4 = vmor %vm1035_vm3, %vm1036_vm2  ;;  %v1081_v30 = vand.u32 2147483648, %v1069_v8  ;;  %v1079_v33 = vand.u32 2147483647, %v1069_v8  ;;  %vm1075_vm7 = vweird.f32 %v1069_v8 }
 0x8b1   : > { %v1032_v9 = vsub.f32 1.0, %v1031_v62  ;;  %v1059_v37 = vmul.f32 %v1058_v23, %v1884_v31  ;;  %v1456_v31 = vld [vmem:[%s1958_s11] ss:$0 sm:$0xff] }
 0x8b2   : > { %v1082_v36 = vor.u32 1.1754944e-38, %v1081_v30  ;;  %vm1080_vm9 = vcmp.eq.f32.partialorder %v1079_v33, 8.507059e+37 }
 0x8b3   : > { %v1033_v12 = vmul.f32 %v1500_v10, %v1032_v9 }
 0x8b5   : > { %v1034_v16 = vadd.f32 %v1500_v10, %v1033_v12 }
 0x8b6   : > { %v1502_v19 = vpop.eup %1501 }
 0x8b7   : > { %v1038_v21 = vsel %vm1037_vm4, %v1500_v10, %v1034_v16  ;;  %v1071_v25 = vmul.f32 %v1502_v19, %v1069_v8  ;;  %vm1076_vm6 = vweird.f32 %v1502_v19 }
 0x8b8   : > { %v1043_v26 = vsel %vm1040_vm5, %v1042_v22, %v1038_v21  ;;  %vm1077_vm8 = vmor %vm1075_vm7, %vm1076_vm6 }
 0x8b9   : > { %v1072_v29 = vsub.f32 1.0, %v1071_v25  ;;  %v1044_v43 = vmul.f32 %v1043_v26, %v1019_v28 }
 0x8bb   : > { %v1073_v42 = vmul.f32 %v1502_v19, %v1072_v29  ;;  %v1314_v38 = vclamps-f32 %v1044_v43, 1.0 }
 0x8bd   : > { %v1074_v34 = vadd.f32 %v1502_v19, %v1073_v42  ;;  %v1087_v40 = vadd.f32 1.0, %v1314_v38 }
 0x8bf   : > { %v1078_v0 = vsel %vm1077_vm8, %v1502_v19, %v1074_v34  ;;  %v1089_v45 = vmul.f32 %v1087_v40, %v1003_v41 }
 0x8c0   : > { %v1083_v39 = vsel %vm1080_vm9, %v1082_v36, %v1078_v0 }
 0x8c1   : > { %v1084_v20 = vmul.f32 %v1083_v39, %v1059_v37 }
 0x8c3   : > { %v1315_v58 = vclamps-f32 %v1084_v20, 1.0 }
 0x8c5   : > { %v1088_v44 = vadd.f32 1.0, %v1315_v58 }
 0x8c7   : > { %v1090_v46 = vmul.f32 %v1088_v44, %v1004_v2 }
 0x8c9   : > { %v1107_v47 = vpack.c.bf16 %v1090_v46, %v1089_v45 }
 0x8cb   : > { %1164 = vmatmul.bf16.vlgmr.msrb.gmra.mxu3 %v1107_v47 }
 0x94e   : > { %v1165_v48 = vpop.f32.mrf.mxu3 }
 0x94f   : > { %v1170_v49 = vadd.f32 %v1165_v48, %v1832_v32 }
 0x951   : > { %v1176_v50 = vadd.f32 %v1456_v31, %v1170_v49 }
 0x953   : > { %1178 = vst.msk [vmem:[%s421_s29] sm:$0xff] %vm430_vm0, %v1176_v50 }
 0x956   : > { %v1167_v18 = vpop.f32.mrf.mxu3 }
 0x957   : > { %v1171_v27 = vadd.f32 %v1167_v18, %v1837_v35 }
 0x959   : > { %v1177_v51 = vadd.f32 %v1456_v31, %v1171_v27 }
 0x95b   : > { %1179 = vst.msk [vmem:[%s421_s29 + $0x8] sm:$0xff] %vm430_vm0, %v1177_v51 }
 0x95c   : > { %1560 = shalt.err (!%p1557_p8)
}
 0x95d   : > { %s1617_s18 = smov 128   ;;  %s1967_s29 = smov 8  }
 0x95e   : > { %1373 = dma.vmem_to_hbm [thread:$0]  (%p1721_p5), %s1194_s0, 256, %s1196_s1, %s1181_s25, %s1617_s18, %s1617_s18, %s1967_s29  }
 0x95f PF: > { %p1385_p9 = scmp.ge.s32.totalorder %s1599_s24, 2  ;;  %s1210_s26 = sand.u32 1, %s1587_s21  }
 0x960   : > { %s1211_s28 = scalar_lea.sflag [#allocation4], %s1210_s26 }
 0x961   : > { %p1380_p10 = pnand %p1385_p9, %p1725_p6 }
 0x963   : > { %p1381_p11 = pneg %p1380_p10 }
 0x965   : > { %1582 = dma.done.wait (%p1381_p11), %s1211_s28, 256  }
 0x966   : > { %1584 = vsyncadd (%p1381_p11), %s1211_s28, 4294967040  ;;  %p23_p12 = scmp.ge.s32.totalorder %s1708_s27, 4   ;;  %s1968_s21 = smov %s1591_s22 }
 0x967   : > { %s1969_s22 = smov %s1595_s23  ;;  %s1970_s23 = smov %s1719_s30 }
 0x968   : > { %s1971_s24 = smov %s1708_s27  ;;  %25 = sbr.rel (!%p23_p12) target bundleno = 7 (0x7), region = 108 }
 0x96d   :  { %1217 = vsyncpa [#allocation3], 1 }
 0x96e   :  { %1219 = vsyncpa [#allocation3 + $0x1], 1 }
 0x96f   :  { %1220 = vsyncpa [#allocation4], 1 }
 0x970   :  { %1222 = vsyncpa [#allocation4 + $0x1], 1 }

// kernel: tpu_custom_call.1
= control target key start
LH: loop header
LB: loop body
LE: loop exit
PB: predicated region body
PF: predicated region fallthrough
CT: control target
= control target key end

     0   :  { %s1947_s0 = inlined_call_operand.vmem [shape: f32[2,16,32], index: 0, kind: input, shape index: {}]   ;;  %s1948_s1 = inlined_call_operand.hbm [shape: f32[1,32], index: 1, kind: input, shape index: {}]   ;;  %s1949_s2 = inlined_call_operand.vmem [shape: f32[1,32], index: 2, kind: input, shape index: {}]   ;;  %s1950_s3 = inlined_call_operand.vmem [shape: bf16[32,96], index: 3, kind: input, shape index: {}]   ;;  %s1951_s4 = inlined_call_operand.vmem [shape: bf16[32,32], index: 4, kind: input, shape index: {}]   ;;  %s1952_s5 = inlined_call_operand.vmem [shape: f32[1,32], index: 5, kind: input, shape index: {}]   ;;  %s1953_s6 = inlined_call_operand.vmem [shape: f32[1,32], index: 6, kind: input, shape index: {}]   ;;  %s1954_s7 = inlined_call_operand.vmem [shape: f32[1,32], index: 7, kind: input, shape index: {}]   ;;  %s1955_s8 = inlined_call_operand.vmem [shape: bf16[32,128], index: 8, kind: input, shape index: {}]   ;;  %s1956_s9 = inlined_call_operand.vmem [shape: f32[1,128], index: 9, kind: input, shape index: {}]   ;;  %s1957_s10 = inlined_call_operand.vmem [shape: bf16[128,32], index: 10, kind: input, shape index: {}]   ;;  %s1958_s11 = inlined_call_operand.vmem [shape: f32[1,32], index: 11, kind: input, shape index: {}]   ;;  %s1959_s12 = inlined_call_operand.hbm [shape: f32[2,16,32], index: 12, kind: output, shape index: {}]  }
   0x1   :  { %1961 = sst [smem:[#allocation8_spill]] %s1947_s0 }
   0x2   :  { %1962 = sst [smem:[#allocation9_spill]] %s1948_s1 }
   0x3   :  { %17 = vsyncpa [#allocation3], 0 }
   0x4   :  { %18 = vsyncpa [#allocation4], 0 }
   0x5   :  { %20 = vsyncpa [#allocation4 + $0x1], 0  ;;  %s1683_s21 = smov 0   ;;  %s1685_s22 = smov 0  }
   0x6   :  { %s1687_s23 = smov 0   ;;  %s1689_s24 = smov 0  }
   0x7 LB: > { %s1704_s25 = sadd.s32 4294967295, %s1599_s24   ;;  %s1270_s26 = sadd.s32 4294967294, %s1599_s24   ;;  %s1599_s24 = sphi %s1689_s24, %s1971_s24   ;;  %s1595_s23 = sphi %s1687_s23, %s1970_s23   ;;  %s1591_s22 = sphi %s1685_s22, %s1969_s22   ;;  %s1587_s21 = sphi %s1683_s21, %s1968_s21  }
   0x8   : > { %s1708_s27 = sadd.s32 1, %s1599_s24   ;;  %s290_s28 = sadd.s32 1, %s1595_s23 }
   0x9   : > { %s287_s29 = ssub.s32 %s1599_s24, %s1708_s27  ;;  %p300_p0 = scmp.ne.s32.totalorder %s1595_s23, %s1591_s22 }
   0xa   : > { %p288_p1 = scmp.eq.s32.totalorder %s287_s29, 0  ;;  %p301_p2 = scmp.eq.s32.totalorder %s1704_s25, 1 }
   0xb   : > { %p306_p3 = scmp.ne.s32.totalorder %s1591_s22, %s1587_s21  ;;  %p307_p4 = scmp.eq.s32.totalorder %s1270_s26, 1 }
   0xc   : > { %s1719_s30 = scalar_select %p288_p1, %s1595_s23, %s290_s28  }
   0xd   : > { %p1721_p5 = por %p301_p2, %p300_p0  ;;  %p1725_p6 = por %p307_p4, %p306_p3 }
   0xe   : > { %p1271_p7 = scmp.ge.s32.totalorder %s1599_s24, 1  ;;  %p314_p8 = scmp.lt.s32.totalorder %s1599_s24, 3 }
   0xf   : > { %p1383_p9 = scmp.eq.s32.totalorder %s1704_s25, 0  ;;  %s1965_s1 = sld [smem:[#allocation9_spill]] }
  0x10   : > { %p315_p10 = pnand %p1271_p7, %p314_p8  ;;  %s1601_s18 = smov [#allocation2]  }
  0x11   : > { %s328_s19 = sshll.u32 %s1601_s18, 4  ;;  %s329_s19 = int_to_ptr.vmem [resolvable:$true] %s328_s19 }
  0x12   : > { %p1375_p11 = pneg %p315_p10  ;;  %379 = sbr.rel (%p315_p10) target bundleno = 2399 (0x95f), region = 68 }
  0x14   : > { %p1376_p12 = pnand %p1383_p9, %p1375_p11 }
  0x15   : > { %s326_s17 = sshll.u32 %s1965_s1, 4  ;;  %s327_s17 = int_to_ptr.hbm [resolvable:$true] %s326_s17 }
  0x16   : > { %1378 = dma.hbm_to_vmem [thread:$0]  (!%p1376_p12), %s327_s17, 16, %s329_s19, [#allocation3]  }
  0x17   : > { %1578 = dma.done.wait (%p1383_p9), [#allocation3], 16  }
  0x18   : > { %1580 = vsyncadd (%p1383_p9), [#allocation3], 4294967280  ;;  %p422_p13 = scmp.lt.s32.totalorder %s1704_s25, 1  ;;  %s1966_s0 = sld [smem:[#allocation8_spill]]  ;;  %vm430_vm0 = vcmask 261120   ;;  %v1602_v4 = vmov 32.0  }
  0x19   : > { %1457 = vrcp.f32 %v1602_v4  ;;  %v1355_v21 = vld [vmem:[%s1950_s3 + $0x8] sm:$0xff]  ;;  %v1354_v23 = vld [vmem:[%s1950_s3] sm:$0xff]  ;;  %s1603_s28 = smov 64   ;;  %s1604_s29 = smov 96   ;;  %vm546_vm8 = vcmask 64512   ;;  %vm567_vm9 = vcmask 130048  }
  0x1a   : > { %s423_s20 = scalar_select %p422_p13, %s1704_s25, 1  ;;  %520 = vmatpush.bf16.msra.mxu0 %v1355_v21  ;;  %v1450_v42 = vld [vmem:[#allocation2] ss:$0 sm:$0xff]  ;;  %vm864_vm10 = vcmask 195584  }
  0x1b   : > { %v1451_v47 = vld [vmem:[%s1949_s2] ss:$0 sm:$0xff]  ;;  %s1606_s16 = smov 120   ;;  %s1607_s17 = smov 88  }
  0x1c   : > { %s1353_s26 = sshll.u32 %s423_s20, 4  ;;  %s1608_s18 = smov 80  }
  0x1d   : > { %s1609_s19 = smov 104   ;;  %s1610_s20 = smov 112  }
  0x1e   : > { %s426_s15 = scalar_lea.vmem %s1966_s0, %s1353_s26  ;;  %521 = vmatpush.bf16.msra.mxu0 %v1354_v23  ;;  %s1611_s26 = smov 56  }
  0x1f   : > { %v1740_v0 = vld [vmem:[%s426_s15] sm:$0xff]  ;;  %v1744_v2 = vld [vmem:[%s426_s15 + $0x8] sm:$0xff]  ;;  %v1458_v5 = vpop.eup %1457  ;;  %s1605_s15 = smov 72  }
  0x20   : > { %v431_v1 = vsel %vm430_vm0, %v1740_v0, 0.0  ;;  %v434_v3 = vsel %vm430_vm0, %v1744_v2, 0.0  ;;  %v438_v6 = vmul.f32 32.0, %v1458_v5  ;;  %vm442_vm1 = vweird.f32 %v1458_v5 }
  0x21   : > { %432 = vadd.xlane.f32.xlu0 %v431_v1 }
  0x22   : > { %v439_v7 = vsub.f32 1.0, %v438_v6 }
  0x24   : > { %v440_v8 = vmul.f32 %v1458_v5, %v439_v7 }
  0x26   : > { %v441_v9 = vadd.f32 %v1458_v5, %v440_v8 }
  0x28   : > { %v1748_v10 = vsel %vm442_vm1, %v1458_v5, %v441_v9 }
  0x29   : > { %435 = vadd.xlane.f32.xlu0 %v434_v3 }
  0x94   : > { %v433_v11 = vpop.xlane.xlu0 %432 }
  0x95   : > { %v444_v12 = vmul.f32 %v1748_v10, %v433_v11 }
  0x97   : > { %v446_v13 = vsub.f32 %v1740_v0, %v444_v12 }
  0x99   : > { %v448_v14 = vmul.f32 %v446_v13, %v446_v13 }
  0x9b   : > { %v450_v15 = vsel %vm430_vm0, %v448_v14, 0.0 }
  0x9c   : > { %451 = vadd.xlane.f32.xlu1 %v450_v15  ;;  %v436_v16 = vpop.xlane.xlu0 %435 }
  0x9d   : > { %v445_v17 = vmul.f32 %v1748_v10, %v436_v16 }
  0x9f   : > { %v447_v18 = vsub.f32 %v1744_v2, %v445_v17 }
  0xa1   : > { %v449_v19 = vmul.f32 %v447_v18, %v447_v18 }
  0xa3   : > { %v453_v20 = vsel %vm430_vm0, %v449_v19, 0.0 }
  0xa4   : > { %454 = vadd.xlane.f32.xlu1 %v453_v20 }
 0x10f   : > { %v452_v22 = vpop.xlane.xlu1 %451 }
 0x110   : > { %v456_v24 = vmul.f32 %v452_v22, %v1748_v10 }
 0x112   : > { %v458_v25 = vadd.f32 1e-05, %v456_v24 }
 0x114   : > { %1459 = vrsqrt.f32 %v458_v25  ;;  %vm466_vm3 = vweird.f32 %v458_v25 }
 0x117   : > { %v455_v26 = vpop.xlane.xlu1 %454 }
 0x118   : > { %v457_v27 = vmul.f32 %v455_v26, %v1748_v10 }
 0x11a   : > { %v1460_v28 = vpop.eup %1459  ;;  %v459_v29 = vadd.f32 1e-05, %v457_v27 }
 0x11b   : > { %v461_v30 = vmul.f32 %v1460_v28, %v458_v25  ;;  %vm467_vm2 = vweird.f32 %v1460_v28 }
 0x11c   : > { %1461 = vrsqrt.f32 %v459_v29  ;;  %vm468_vm4 = vmor %vm466_vm3, %vm467_vm2  ;;  %vm476_vm6 = vweird.f32 %v459_v29 }
 0x11d   : > { %v462_v31 = vmul.f32 %v1460_v28, %v461_v30 }
 0x11f   : > { %v463_v32 = vmul.f32 0.5, %v462_v31 }
 0x121   : > { %v464_v33 = vsub.f32 1.5, %v463_v32 }
 0x122   : > { %v1462_v34 = vpop.eup %1461 }
 0x123   : > { %v465_v35 = vmul.f32 %v1460_v28, %v464_v33  ;;  %v471_v36 = vmul.f32 %v1462_v34, %v459_v29  ;;  %vm477_vm5 = vweird.f32 %v1462_v34 }
 0x124   : > { %vm478_vm7 = vmor %vm476_vm6, %vm477_vm5 }
 0x125   : > { %v472_v37 = vmul.f32 %v1462_v34, %v471_v36  ;;  %v469_v38 = vsel %vm468_vm4, %v1460_v28, %v465_v35 }
 0x126   : > { %v480_v41 = vmul.f32 %v469_v38, %v446_v13 }
 0x127   : > { %v473_v39 = vmul.f32 0.5, %v472_v37 }
 0x128   : > { %v486_v46 = vmul.f32 %v1450_v42, %v480_v41 }
 0x129   : > { %v474_v40 = vsub.f32 1.5, %v473_v39 }
 0x12a   : > { %v492_v49 = vadd.f32 %v1451_v47, %v486_v46 }
 0x12b   : > { %v475_v43 = vmul.f32 %v1462_v34, %v474_v40 }
 0x12d   : > { %v479_v44 = vsel %vm478_vm7, %v1462_v34, %v475_v43 }
 0x12e   : > { %v481_v45 = vmul.f32 %v479_v44, %v447_v18 }
 0x130   : > { %v487_v48 = vmul.f32 %v1450_v42, %v481_v45 }
 0x132   : > { %v493_v50 = vadd.f32 %v1451_v47, %v487_v48 }
 0x134   : > { %v498_v51 = vpack.c.bf16 %v493_v50, %v492_v49 }
 0x136   : > { %1287 = vmatmul.msk.bf16.vlgmr.msra.gmra.mxu0 %vm430_vm0, %v498_v51 }
 0x1b3   : > { %v523_v52 = vpop.f32.mrf.mxu0 }
 0x1b4   : > { %v532_v53 = vpack.c.bf16 %v523_v52, %v523_v52  ;;  %v528_v60 = vmul.f32 0.35355338, %v523_v52 }
 0x1b6   : > { %v541_v56 = vunpack.c.l.b16 %v532_v53  ;;  %v530_v63 = vpack.c.bf16 %v528_v60, %v528_v60 }
 0x1b8   : > { %v536_v4 = vunpack.c.l.b16 %v530_v63 }
 0x1bb   : > { %v525_v54 = vpop.f32.mrf.mxu0 }
 0x1bc   : > { %v533_v55 = vpack.c.bf16 %v525_v54, %v525_v54  ;;  %v529_v59 = vmul.f32 0.35355338, %v525_v54 }
 0x1be   : > { %v542_v57 = vunpack.c.l.b16 %v533_v55  ;;  %v531_v61 = vpack.c.bf16 %v529_v59, %v529_v59 }
 0x1c0   : > { %v1768_v58 = vpack.c.b16 %v542_v57, %v541_v56  ;;  %v537_v3 = vunpack.c.l.b16 %v531_v61 }
 0x1c2   : > { %597 = vrot.lane.b32.xlu1 %v1768_v58, %s1603_s28  ;;  %544 = vrot.lane.b32.xlu2 %v1768_v58, %s1604_s29  ;;  %v538_v5 = vpack.c.b16 %v537_v3, %v536_v4  ;;  %s1612_s28 = smov 48   ;;  %s1613_s29 = smov 40  }
 0x21c   : > { %v545_v62 = vpop.permute.xlu2 %544 }
 0x21d   : > { %v551_v1 = vsel %vm546_vm8, %v545_v62, 0 }
 0x21e   : > { %560 = vmatpush.bf16.xpose.msra.mxu1 %v551_v1 }
 0x225   : > { %1288 = vmatmul.msk.bf16.vlgmr.msra.gmra.mxu1 %vm546_vm8, %v538_v5 }
 0x234   : > { %v598_v6 = vpop.permute.xlu1 %597 }
 0x235   : > { %610 = vmatpush.bf16.msra.mxu2 %v598_v6 }
 0x2a2   : > { %v562_v7 = vpop.f32.mrf.mxu1 }
 0x2a3   : > { %v568_v8 = vsel %vm567_vm9, %v562_v7, -inf }
 0x2a4   : > { %569 = vmax.xlane.f32.xlu2 %v568_v8 }
 0x2aa   : > { %v564_v9 = vpop.f32.mrf.mxu1 }
 0x2ab   : > { %v571_v11 = vsel %vm567_vm9, %v564_v9, -inf }
 0x2ac   : > { %572 = vmax.xlane.f32.xlu0 %v571_v11 }
 0x2bc   : > { %765 = vrot.lane.b32.xlu2 %v1768_v58, %s1605_s15  ;;  %s1960_s15 = smov 8  }
 0x317   : > { %v570_v12 = vpop.xlane.xlu2 %569 }
 0x318   : > { %v574_v13 = vsub.f32 %v562_v7, %v570_v12 }
 0x31a   : > { %v576_v14 = vmul.f32 1.442695, %v574_v13 }
 0x31c   : > { %1463 = vpow2.f32 %v576_v14 }
 0x31f   : > { %v766_v15 = vpop.permute.xlu2 %765  ;;  %v573_v16 = vpop.xlane.xlu0 %572 }
 0x320   : > { %v575_v17 = vsub.f32 %v564_v9, %v573_v16  ;;  %v771_v18 = vsel %vm546_vm8, %v766_v15, 0 }
 0x321   : > { %780 = vmatpush.bf16.xpose.msra.mxu3 %v771_v18 }
 0x322   : > { %v1464_v19 = vpop.eup %1463  ;;  %v578_v20 = vmul.f32 1.442695, %v575_v17 }
 0x323   : > { %v580_v21 = vsel %vm567_vm9, %v1464_v19, 0.0 }
 0x324   : > { %1465 = vpow2.f32 %v578_v20  ;;  %581 = vadd.xlane.f32.xlu1 %v580_v21 }
 0x32a   : > { %v1466_v22 = vpop.eup %1465 }
 0x32b   : > { %v583_v23 = vsel %vm567_vm9, %v1466_v22, 0.0 }
 0x32c   : > { %584 = vadd.xlane.f32.xlu0 %v583_v23 }
 0x33d   : > { %617 = vrot.lane.b32.xlu1 %v538_v5, %s1606_s16  ;;  %s1615_s16 = smov 16  }
 0x340   : > { %619 = vrot.lane.b32.xlu0 %v1768_v58, %s1607_s17  ;;  %s1616_s17 = smov 24  }
 0x345   : > { %692 = vrot.lane.b32.xlu1 %v1768_v58, %s1608_s18  ;;  %s419_s18 = sand.u32 1, %s1591_s22  }
 0x348   : > { %763 = vrot.lane.b32.xlu0 %v538_v5, %s1609_s19  ;;  %s1276_s19 = sshll.u32 %s419_s18, 4 }
 0x350   : > { %690 = vrot.lane.b32.xlu0 %v538_v5, %s1610_s20 }
 0x397   : > { %v582_v24 = vpop.xlane.xlu1 %581 }
 0x398   : > { %1467 = vrcp.f32 %v582_v24 }
 0x39e   : > { %v1468_v26 = vpop.eup %1467 }
 0x39f   : > { %v585_v25 = vpop.xlane.xlu0 %584  ;;  %v588_v27 = vmul.f32 %v1468_v26, %v1464_v19 }
 0x3a0   : > { %1469 = vrcp.f32 %v585_v25 }
 0x3a1   : > { %v590_v30 = vpack.c.bf16 %v588_v27, %v588_v27 }
 0x3a3   : > { %v594_v32 = vunpack.c.l.b16 %v590_v30 }
 0x3a6   : > { %v1470_v28 = vpop.eup %1469 }
 0x3a7   : > { %v589_v29 = vmul.f32 %v1470_v28, %v1466_v22 }
 0x3a9   : > { %v591_v31 = vpack.c.bf16 %v589_v29, %v589_v29 }
 0x3ab   : > { %v595_v33 = vunpack.c.l.b16 %v591_v31 }
 0x3ad   : > { %v596_v34 = vpack.c.b16 %v595_v33, %v594_v32 }
 0x3af   : > { %v618_v35 = vpop.permute.xlu1 %617  ;;  %1289 = vmatmul.msk.bf16.vlgmr.msra.gmra.mxu2 %vm567_vm9, %v596_v34 }
 0x3b2   : > { %v620_v36 = vpop.permute.xlu0 %619 }
 0x3b3   : > { %v625_v37 = vsel %vm546_vm8, %v620_v36, 0 }
 0x3b4   : > { %634 = vmatpush.bf16.xpose.msrb.mxu2 %v625_v37 }
 0x3b7   : > { %v693_v38 = vpop.permute.xlu1 %692 }
 0x3b8   : > { %v698_v39 = vsel %vm546_vm8, %v693_v38, 0 }
 0x3b9   : > { %707 = vmatpush.bf16.xpose.msrb.mxu0 %v698_v39 }
 0x3ba   : > { %v764_v40 = vpop.permute.xlu0 %763 }
 0x3bb   : > { %1294 = vmatmul.msk.bf16.vlgmr.msra.gmra.mxu3 %vm546_vm8, %v764_v40 }
 0x3bf   : > { %1290 = vmatmul.msk.bf16.vlgmr.msrb.gmra.mxu2 %vm546_vm8, %v618_v35 }
 0x3c2   : > { %v691_v41 = vpop.permute.xlu0 %690 }
 0x3c3   : > { %1292 = vmatmul.msk.bf16.vlgmr.msrb.gmra.mxu0 %vm546_vm8, %v691_v41 }
 0x432   : > { %v1788_v42 = vpop.f32.mrf.mxu2 }
 0x43a   : > { %v1790_v43 = vpop.f32.mrf.mxu2 }
 0x43e   : > { %v782_v44 = vpop.f32.mrf.mxu3 }
 0x43f   : > { %v787_v45 = vsel %vm567_vm9, %v782_v44, -inf }
 0x440   : > { %788 = vmax.xlane.f32.xlu2 %v787_v45  ;;  %v709_v46 = vpop.f32.mrf.mxu0 }
 0x441   : > { %v714_v55 = vsel %vm567_vm9, %v709_v46, -inf }
 0x442   : > { %v636_v47 = vpop.f32.mrf.mxu2 }
 0x443   : > { %v641_v48 = vsel %vm567_vm9, %v636_v47, -inf }
 0x444   : > { %642 = vmax.xlane.f32.xlu1 %v641_v48 }
 0x446   : > { %v784_v49 = vpop.f32.mrf.mxu3 }
 0x447   : > { %v790_v54 = vsel %vm567_vm9, %v784_v49, -inf }
 0x448   : > { %v711_v50 = vpop.f32.mrf.mxu0 }
 0x449   : > { %v717_v51 = vsel %vm567_vm9, %v711_v50, -inf }
 0x44a   : > { %v638_v52 = vpop.f32.mrf.mxu2  ;;  %718 = vmax.xlane.f32.xlu2 %v717_v51 }
 0x44b   : > { %v644_v53 = vsel %vm567_vm9, %v638_v52, -inf }
 0x44c   : > { %645 = vmax.xlane.f32.xlu0 %v644_v53  ;;  %791 = vmax.xlane.f32.xlu1 %v790_v54 }
 0x454   : > { %715 = vmax.xlane.f32.xlu0 %v714_v55 }
 0x462   : > { %670 = vrot.lane.b32.xlu2 %v1768_v58, %s1611_s26 }
 0x4b3   : > { %v789_v56 = vpop.xlane.xlu2 %788 }
 0x4b4   : > { %v793_v57 = vsub.f32 %v782_v44, %v789_v56 }
 0x4b6   : > { %v795_v59 = vmul.f32 1.442695, %v793_v57 }
 0x4b7   : > { %v643_v60 = vpop.xlane.xlu1 %642 }
 0x4b8   : > { %1471 = vpow2.f32 %v795_v59  ;;  %v647_v12 = vsub.f32 %v636_v47, %v643_v60 }
 0x4ba   : > { %v649_v17 = vmul.f32 1.442695, %v647_v12  ;;  %v1357_v12 = vld [vmem:[%s1951_s4 + $0x8] sm:$0xff] }
 0x4bb   : > { %893 = vmatpush.bf16.msra.mxu0 %v1357_v12 }
 0x4bd   : > { %v719_v61 = vpop.xlane.xlu2 %718 }
 0x4be   : > { %v1799_v62 = vpop.eup %1471  ;;  %v721_v5 = vsub.f32 %v711_v50, %v719_v61 }
 0x4bf   : > { %v792_v63 = vpop.xlane.xlu1 %791  ;;  %v646_v1 = vpop.xlane.xlu0 %645  ;;  %v799_v3 = vsel %vm567_vm9, %v1799_v62, 0.0 }
 0x4c0   : > { %v794_v4 = vsub.f32 %v784_v49, %v792_v63  ;;  %800 = vadd.xlane.f32.xlu1 %v799_v3  ;;  %v724_v8 = vmul.f32 1.442695, %v721_v5  ;;  %v648_v14 = vsub.f32 %v638_v52, %v646_v1 }
 0x4c2   : > { %v797_v6 = vmul.f32 1.442695, %v794_v4  ;;  %v651_v18 = vmul.f32 1.442695, %v648_v14 }
 0x4c4   : > { %1473 = vpow2.f32 %v797_v6 }
 0x4c5   : > { %v671_v7 = vpop.permute.xlu2 %670  ;;  %1475 = vpow2.f32 %v724_v8 }
 0x4c6   : > { %683 = vmatpush.bf16.msra.mxu2 %v671_v7 }
 0x4c7   : > { %v716_v9 = vpop.xlane.xlu0 %715 }
 0x4c8   : > { %v720_v11 = vsub.f32 %v709_v46, %v716_v9 }
 0x4ca   : > { %v1474_v13 = vpop.eup %1473  ;;  %v722_v15 = vmul.f32 1.442695, %v720_v11 }
 0x4cb   : > { %v802_v16 = vsel %vm567_vm9, %v1474_v13, 0.0  ;;  %v1476_v19 = vpop.eup %1475 }
 0x4cc   : > { %1477 = vpow2.f32 %v722_v15  ;;  %803 = vadd.xlane.f32.xlu0 %v802_v16  ;;  %v729_v21 = vsel %vm567_vm9, %v1476_v19, 0.0 }
 0x4cd   : > { %1479 = vpow2.f32 %v649_v17 }
 0x4ce   : > { %1481 = vpow2.f32 %v651_v18 }
 0x4d2   : > { %v1478_v20 = vpop.eup %1477 }
 0x4d3   : > { %v726_v22 = vsel %vm567_vm9, %v1478_v20, 0.0  ;;  %v1480_v23 = vpop.eup %1479 }
 0x4d4   : > { %730 = vadd.xlane.f32.xlu0 %v729_v21  ;;  %727 = vadd.xlane.f32.xlu1 %v726_v22  ;;  %v1482_v24 = vpop.eup %1481  ;;  %v653_v26 = vsel %vm567_vm9, %v1480_v23, 0.0 }
 0x4d5   : > { %v656_v25 = vsel %vm567_vm9, %v1482_v24, 0.0 }
 0x4dc   : > { %657 = vadd.xlane.f32.xlu0 %v656_v25  ;;  %654 = vadd.xlane.f32.xlu1 %v653_v26 }
 0x4f0   : > { %743 = vrot.lane.b32.xlu0 %v1768_v58, %s1612_s28  ;;  %s1368_s28 = sshll.u32 %s1704_s25, 4  ;;  %s1181_s25 = scalar_lea.sflag [#allocation4], %s419_s18 }
 0x4f5   : > { %816 = vrot.lane.b32.xlu1 %v1768_v58, %s1613_s29  ;;  %s421_s29 = scalar_lea.vmem [#allocation5], %s1276_s19 }
 0x4f6   : > { %s1193_s0 = sshll.u32 %s421_s29, 4  ;;  %s1194_s0 = int_to_ptr.vmem [resolvable:$true] %s1193_s0 }
 0x533   : > { %v801_v27 = vpop.xlane.xlu1 %800 }
 0x53f   : > { %v804_v28 = vpop.xlane.xlu0 %803 }
 0x547   : > { %v728_v29 = vpop.xlane.xlu1 %727  ;;  %v731_v30 = vpop.xlane.xlu0 %730 }
 0x548   : > { %1483 = vrcp.f32 %v728_v29 }
 0x549   : > { %1485 = vrcp.f32 %v731_v30  ;;  %v1452_v30 = vld [vmem:[%s1952_s5] ss:$0 sm:$0xff] }
 0x54e   : > { %v1484_v33 = vpop.eup %1483 }
 0x54f   : > { %v655_v31 = vpop.xlane.xlu1 %654  ;;  %v658_v32 = vpop.xlane.xlu0 %657  ;;  %v734_v38 = vmul.f32 %v1484_v33, %v1478_v20 }
 0x550   : > { %1487 = vrcp.f32 %v655_v31  ;;  %v1486_v34 = vpop.eup %1485 }
 0x551   : > { %1489 = vrcp.f32 %v658_v32  ;;  %v735_v39 = vmul.f32 %v1486_v34, %v1476_v19  ;;  %v736_v45 = vpack.c.bf16 %v734_v38, %v734_v38 }
 0x552   : > { %1491 = vrcp.f32 %v804_v28 }
 0x553   : > { %1493 = vrcp.f32 %v801_v27  ;;  %v737_v46 = vpack.c.bf16 %v735_v39, %v735_v39  ;;  %v740_v50 = vunpack.c.l.b16 %v736_v45 }
 0x555   : > { %v741_v51 = vunpack.c.l.b16 %v737_v46  ;;  %v1359_v46 = vld [vmem:[%s1955_s8 + $0x8] sm:$0xff] }
 0x556   : > { %v1488_v35 = vpop.eup %1487 }
 0x557   : > { %v1490_v36 = vpop.eup %1489  ;;  %v661_v37 = vmul.f32 %v1488_v35, %v1480_v23  ;;  %v742_v56 = vpack.c.b16 %v741_v51, %v740_v50 }
 0x558   : > { %v662_v40 = vmul.f32 %v1490_v36, %v1482_v24  ;;  %v1492_v49 = vpop.eup %1491 }
 0x559   : > { %v663_v58 = vpack.c.bf16 %v661_v37, %v661_v37  ;;  %v1494_v52 = vpop.eup %1493  ;;  %v808_v53 = vmul.f32 %v1492_v49, %v1474_v13  ;;  %v1356_v13 = vld [vmem:[%s1951_s4] sm:$0xff] }
 0x55a   : > { %v664_v41 = vpack.c.bf16 %v662_v40, %v662_v40  ;;  %v807_v55 = vmul.f32 %v1494_v52, %v1799_v62  ;;  %894 = vmatpush.bf16.msra.mxu0 %v1356_v13  ;;  %v1358_v49 = vld [vmem:[%s1955_s8] sm:$0xff] }
 0x55b   : > { %v667_v44 = vunpack.c.l.b16 %v663_v58  ;;  %v810_v57 = vpack.c.bf16 %v808_v53, %v808_v53 }
 0x55c   : > { %v668_v47 = vunpack.c.l.b16 %v664_v41  ;;  %v809_v60 = vpack.c.bf16 %v807_v55, %v807_v55 }
 0x55d   : > { %v814_v61 = vunpack.c.l.b16 %v810_v57 }
 0x55e   : > { %v669_v48 = vpack.c.b16 %v668_v47, %v667_v44  ;;  %v813_v63 = vunpack.c.l.b16 %v809_v60 }
 0x560   : > { %1291 = vmatmul.msk.bf16.vlgmr.msra.gmra.mxu2 %vm567_vm9, %v669_v48  ;;  %v815_v1 = vpack.c.b16 %v814_v61, %v813_v63 }
 0x562   : > { %v744_v54 = vpop.permute.xlu0 %743 }
 0x563   : > { %756 = vmatpush.bf16.msrb.mxu1 %v744_v54 }
 0x566   : > { %1293 = vmatmul.msk.bf16.vlgmr.msrb.gmra.mxu1 %vm567_vm9, %v742_v56 }
 0x567   : > { %v817_v59 = vpop.permute.xlu1 %816  ;;  %995 = vmatpush.bf16.msra.mxu1 %v1359_v46  ;;  %v1362_v46 = vld [vmem:[%s1957_s10 + $0x10] sm:$0xff] }
 0x568   : > { %829 = vmatpush.bf16.msrb.mxu2 %v817_v59 }
 0x56b   : > { %996 = vmatpush.bf16.msra.mxu1 %v1358_v49 }
 0x570   : > { %1295 = vmatmul.msk.bf16.vlgmr.msrb.gmra.mxu2 %vm567_vm9, %v815_v1 }
 0x5e3   : > { %v685_v3 = vpop.f32.mrf.mxu2  ;;  %v758_v4 = vpop.f32.mrf.mxu1 }
 0x5eb   : > { %v687_v5 = vpop.f32.mrf.mxu2  ;;  %v760_v62 = vpop.f32.mrf.mxu1 }
 0x5ec   : > { %v1435_v6 = vpack.i.bf16 %v687_v5, %v685_v3  ;;  %v1440_v8 = vpack.i.bf16 %v760_v62, %v758_v4 }
 0x5ee   : > { %1436 = vrot.lane.b32.xlu2 %v1435_v6, %s1960_s15  ;;  %s1192_s15 = scalar_lea.hbm %s1959_s12, %s1368_s28 }
 0x5ef   : > { %s1195_s1 = sshll.u32 %s1192_s15, 4  ;;  %s1196_s1 = int_to_ptr.hbm [resolvable:$true] %s1195_s1 }
 0x5f0   : > { %s1547_s20 = sshra.s32 %s1196_s1, 4  ;;  %s1548_s20 = int_to_ptr.hbm [resolvable:$true] %s1547_s20 }
 0x5f1   : > { %s1549_s19 = scalar_lea.hbm %s1548_s20, 16  ;;  %p1554_p3 = scmp.lt.s32.totalorder %s1548_s20, %s1959_s12 }
 0x5f2   : > { %p1550_p0 = scmp.ne.s32.totalorder %s1548_s20, %s1549_s19 }
 0x5f3   : > { %v831_v7 = vpop.f32.mrf.mxu2 }
 0x5f4   : > { %p1551_p1 = pnand %p1550_p0, %p1721_p5 }
 0x5f6   : > { %1441 = vrot.lane.b32.xlu2 %v1440_v8, %s1615_s16  ;;  %v1454_v8 = vld [vmem:[%s1954_s7] ss:$0 sm:$0xff]  ;;  %p1552_p2 = pneg %p1551_p1  ;;  %s1553_s16 = scalar_lea.hbm %s1959_s12, 32 }
 0x5f7   : > { %p1555_p4 = scmp.lt.s32.totalorder %s1553_s16, %s1549_s19 }
 0x5f9   : > { %p1556_p7 = por %p1555_p4, %p1554_p3 }
 0x5fb   : > { %v833_v9 = vpop.f32.mrf.mxu2  ;;  %p1557_p8 = pnand %p1556_p7, %p1552_p2 }
 0x5fc   : > { %v1445_v11 = vpack.i.bf16 %v833_v9, %v831_v7 }
 0x5fe   : > { %1446 = vrot.lane.b32.xlu0 %v1445_v11, %s1616_s17 }
 0x648   : > { %v1437_v14 = vpop.permute.xlu2 %1436 }
 0x649   : > { %v1439_v16 = vunpack.i.h.bf16 %v1437_v14  ;;  %v1438_v17 = vunpack.i.l.bf16 %v1437_v14 }
 0x64b   : > { %v861_v21 = vsel %vm546_vm8, %v1790_v43, %v1439_v16  ;;  %v860_v22 = vsel %vm546_vm8, %v1788_v42, %v1438_v17  ;;  %v1455_v16 = vld [vmem:[%s1956_s9] ss:$0 sm:$0xff] }
 0x650   : > { %v1442_v15 = vpop.permute.xlu2 %1441 }
 0x651   : > { %v1444_v18 = vunpack.i.h.bf16 %v1442_v15  ;;  %v1443_v19 = vunpack.i.l.bf16 %v1442_v15 }
 0x653   : > { %v863_v25 = vsel %vm567_vm9, %v861_v21, %v1444_v18  ;;  %v862_v26 = vsel %vm567_vm9, %v860_v22, %v1443_v19  ;;  %v1367_v19 = vld [vmem:[%s1957_s10 + $0x38] sm:$0xff]  ;;  %v1366_v22 = vld [vmem:[%s1957_s10 + $0x30] sm:$0xff] }
 0x654   : > { %1156 = vmatpush.bf16.msrb.mxu3 %v1367_v19 }
 0x658   : > { %1157 = vmatpush.bf16.msrb.mxu3 %v1366_v22 }
 0x670   : > { %v1447_v20 = vpop.permute.xlu0 %1446 }
 0x671   : > { %v1449_v23 = vunpack.i.h.bf16 %v1447_v20  ;;  %v1448_v24 = vunpack.i.l.bf16 %v1447_v20 }
 0x673   : > { %v866_v27 = vsel %vm864_vm10, %v863_v25, %v1449_v23  ;;  %v865_v28 = vsel %vm864_vm10, %v862_v26, %v1448_v24 }
 0x674   : > { %v871_v29 = vpack.c.bf16 %v866_v27, %v865_v28  ;;  %v1365_v28 = vld [vmem:[%s1957_s10 + $0x28] sm:$0xff] }
 0x675   : > { %1158 = vmatpush.bf16.msrb.mxu3 %v1365_v28 }
 0x676   : > { %1304 = vmatmul.msk.bf16.vlgmr.msra.gmra.mxu0 %vm430_vm0, %v871_v29 }
 0x6f3   : > { %v896_v31 = vpop.f32.mrf.mxu0 }
 0x6f4   : > { %v901_v43 = vadd.f32 %v896_v31, %v1740_v0 }
 0x6f6   : > { %v1832_v32 = vadd.f32 %v1452_v30, %v901_v43 }
 0x6f8   : > { %v909_v42 = vsel %vm430_vm0, %v1832_v32, 0.0 }
 0x6f9   : > { %910 = vadd.xlane.f32.xlu2 %v909_v42  ;;  %v1364_v42 = vld [vmem:[%s1957_s10 + $0x20] sm:$0xff] }
 0x6fa   : > { %1159 = vmatpush.bf16.msrb.mxu3 %v1364_v42 }
 0x6fb   : > { %v898_v33 = vpop.f32.mrf.mxu0 }
 0x6fc   : > { %v902_v34 = vadd.f32 %v898_v33, %v1744_v2 }
 0x6fe   : > { %v1837_v35 = vadd.f32 %v1452_v30, %v902_v34 }
 0x700   : > { %v912_v36 = vsel %vm430_vm0, %v1837_v35, 0.0 }
 0x701   : > { %913 = vadd.xlane.f32.xlu1 %v912_v36 }
 0x76c   : > { %v911_v37 = vpop.xlane.xlu2 %910 }
 0x76d   : > { %v915_v38 = vmul.f32 %v911_v37, %v1748_v10 }
 0x76f   : > { %v917_v0 = vsub.f32 %v1832_v32, %v915_v38 }
 0x771   : > { %v919_v39 = vmul.f32 %v917_v0, %v917_v0 }
 0x773   : > { %v921_v40 = vsel %vm430_vm0, %v919_v39, 0.0 }
 0x774   : > { %922 = vadd.xlane.f32.xlu0 %v921_v40  ;;  %v914_v58 = vpop.xlane.xlu1 %913 }
 0x775   : > { %v916_v41 = vmul.f32 %v914_v58, %v1748_v10 }
 0x777   : > { %v918_v2 = vsub.f32 %v1837_v35, %v916_v41 }
 0x779   : > { %v920_v44 = vmul.f32 %v918_v2, %v918_v2 }
 0x77b   : > { %v924_v45 = vsel %vm430_vm0, %v920_v44, 0.0 }
 0x77c   : > { %925 = vadd.xlane.f32.xlu2 %v924_v45 }
 0x7e7   : > { %v923_v47 = vpop.xlane.xlu0 %922 }
 0x7e8   : > { %v927_v48 = vmul.f32 %v923_v47, %v1748_v10 }
 0x7ea   : > { %v929_v50 = vadd.f32 1e-05, %v927_v48 }
 0x7ec   : > { %1495 = vrsqrt.f32 %v929_v50  ;;  %vm937_vm12 = vweird.f32 %v929_v50 }
 0x7ef   : > { %v926_v51 = vpop.xlane.xlu2 %925 }
 0x7f0   : > { %v928_v52 = vmul.f32 %v926_v51, %v1748_v10  ;;  %v1453_v10 = vld [vmem:[%s1953_s6] ss:$0 sm:$0xff] }
 0x7f2   : > { %v1496_v53 = vpop.eup %1495  ;;  %v930_v54 = vadd.f32 1e-05, %v928_v52 }
 0x7f3   : > { %v932_v55 = vmul.f32 %v1496_v53, %v929_v50  ;;  %vm938_vm11 = vweird.f32 %v1496_v53 }
 0x7f4   : > { %1497 = vrsqrt.f32 %v930_v54  ;;  %vm939_vm13 = vmor %vm937_vm12, %vm938_vm11  ;;  %vm947_vm15 = vweird.f32 %v930_v54 }
 0x7f5   : > { %v933_v56 = vmul.f32 %v1496_v53, %v932_v55 }
 0x7f7   : > { %v934_v57 = vmul.f32 0.5, %v933_v56 }
 0x7f9   : > { %v935_v59 = vsub.f32 1.5, %v934_v57 }
 0x7fa   : > { %v1498_v60 = vpop.eup %1497 }
 0x7fb   : > { %v936_v61 = vmul.f32 %v1496_v53, %v935_v59  ;;  %v942_v63 = vmul.f32 %v1498_v60, %v930_v54  ;;  %vm948_vm14 = vweird.f32 %v1498_v60  ;;  %v1361_v54 = vld [vmem:[%s1957_s10 + $0x8] sm:$0xff] }
 0x7fc   : > { %vm949_vm1 = vmor %vm947_vm15, %vm948_vm14 }
 0x7fd   : > { %v943_v1 = vmul.f32 %v1498_v60, %v942_v63  ;;  %v940_v3 = vsel %vm939_vm13, %v1496_v53, %v936_v61  ;;  %v1360_v61 = vld [vmem:[%s1957_s10] sm:$0xff] }
 0x7fe   : > { %v951_v6 = vmul.f32 %v940_v3, %v917_v0  ;;  %v1363_v0 = vld [vmem:[%s1957_s10 + $0x18] sm:$0xff] }
 0x7ff   : > { %v944_v4 = vmul.f32 0.5, %v943_v1  ;;  %1160 = vmatpush.bf16.msrb.mxu3 %v1363_v0 }
 0x800   : > { %v957_v9 = vmul.f32 %v1453_v10, %v951_v6 }
 0x801   : > { %v945_v5 = vsub.f32 1.5, %v944_v4 }
 0x802   : > { %v963_v13 = vadd.f32 %v1454_v8, %v957_v9 }
 0x803   : > { %v946_v62 = vmul.f32 %v1498_v60, %v945_v5  ;;  %1161 = vmatpush.bf16.msrb.mxu3 %v1362_v46 }
 0x805   : > { %v950_v7 = vsel %vm949_vm1, %v1498_v60, %v946_v62 }
 0x806   : > { %v952_v11 = vmul.f32 %v950_v7, %v918_v2 }
 0x807   : > { %1162 = vmatpush.bf16.msrb.mxu3 %v1361_v54 }
 0x808   : > { %v958_v12 = vmul.f32 %v1453_v10, %v952_v11 }
 0x80a   : > { %v964_v14 = vadd.f32 %v1454_v8, %v958_v12 }
 0x80b   : > { %1163 = vmatpush.bf16.msrb.mxu3 %v1360_v61 }
 0x80c   : > { %v969_v15 = vpack.c.bf16 %v964_v14, %v963_v13 }
 0x80e   : > { %1313 = vmatmul.msk.bf16.vlgmr.msra.gmra.mxu1 %vm430_vm0, %v969_v15 }
 0x88b   : > { %v998_v17 = vpop.f32.mrf.mxu1 }
 0x88c   : > { %v1865_v18 = vadd.f32 %v1455_v16, %v998_v17 }
 0x88e   : > { %v1871_v20 = vmul.f32 0.70710677, %v1865_v18 }
 0x890   : > { %v1007_v21 = vmul.f32 %v1871_v20, %v1871_v20 }
 0x892   : > { %v1008_v23 = vmin.f32 %v1007_v21, 16.0 }
 0x893   : > { %v1000_v24 = vpop.f32.mrf.mxu1 }
 0x894   : > { %v1009_v25 = vmul.f32 2.1237322e-06, %v1008_v23  ;;  %v1020_v26 = vmul.f32 3.8918573e-05, %v1008_v23  ;;  %v1878_v27 = vadd.f32 %v1455_v16, %v1000_v24 }
 0x896   : > { %v1010_v29 = vadd.f32 0.00028619796, %v1009_v25  ;;  %v1021_v30 = vadd.f32 0.001143296, %v1020_v26  ;;  %v1884_v31 = vmul.f32 0.70710677, %v1878_v27 }
 0x898   : > { %v1022_v43 = vmul.f32 %v1021_v30, %v1008_v23  ;;  %v1047_v33 = vmul.f32 %v1884_v31, %v1884_v31  ;;  %v1011_v34 = vmul.f32 %v1010_v29, %v1008_v23 }
 0x89a   : > { %v1023_v36 = vadd.f32 0.014752088, %v1022_v43  ;;  %v1048_v37 = vmin.f32 %v1047_v33, 16.0  ;;  %v1012_v58 = vadd.f32 0.0036580483, %v1011_v34 }
 0x89c   : > { %v1024_v38 = vmul.f32 %v1023_v36, %v1008_v23  ;;  %v1049_v39 = vmul.f32 2.1237322e-06, %v1048_v37  ;;  %v1060_v40 = vmul.f32 3.8918573e-05, %v1048_v37  ;;  %v1013_v49 = vmul.f32 %v1012_v58, %v1008_v23 }
 0x89e   : > { %v1025_v41 = vadd.f32 0.112945676, %v1024_v38  ;;  %v1050_v2 = vadd.f32 0.00028619796, %v1049_v39  ;;  %v1061_v44 = vadd.f32 0.001143296, %v1060_v40 }
 0x89f   : > { %v1014_v56 = vadd.f32 0.05243302, %v1013_v49 }
 0x8a0   : > { %v1026_v45 = vmul.f32 %v1025_v41, %v1008_v23  ;;  %v1051_v47 = vmul.f32 %v1050_v2, %v1048_v37  ;;  %v1062_v48 = vmul.f32 %v1061_v44, %v1048_v37  ;;  %v1003_v41 = vmul.f32 0.5, %v1865_v18 }
 0x8a1   : > { %v1015_v1 = vmul.f32 %v1014_v56, %v1008_v23  ;;  %v1004_v2 = vmul.f32 0.5, %v1878_v27 }
 0x8a2   : > { %v1027_v50 = vadd.f32 0.4994258, %v1026_v45  ;;  %v1052_v51 = vadd.f32 0.0036580483, %v1051_v47  ;;  %v1063_v52 = vadd.f32 0.014752088, %v1062_v48 }
 0x8a3   : > { %v1016_v6 = vadd.f32 0.18741608, %v1015_v1 }
 0x8a4   : > { %v1028_v53 = vmul.f32 %v1027_v50, %v1008_v23  ;;  %v1064_v55 = vmul.f32 %v1063_v52, %v1048_v37  ;;  %v1053_v59 = vmul.f32 %v1052_v51, %v1048_v37 }
 0x8a5   : > { %v1017_v11 = vmul.f32 %v1016_v6, %v1008_v23 }
 0x8a6   : > { %v1029_v57 = vadd.f32 1.0, %v1028_v53  ;;  %v1065_v60 = vadd.f32 0.112945676, %v1064_v55  ;;  %v1054_v3 = vadd.f32 0.05243302, %v1053_v59 }
 0x8a7   : > { %v1018_v17 = vadd.f32 1.1283791, %v1017_v11 }
 0x8a8   : > { %1499 = vrcp.f32 %v1029_v57  ;;  %v1066_v63 = vmul.f32 %v1065_v60, %v1048_v37  ;;  %v1055_v7 = vmul.f32 %v1054_v3, %v1048_v37  ;;  %v1041_v13 = vand.u32 2147483648, %v1029_v57 }
 0x8a9   : > { %v1039_v15 = vand.u32 2147483647, %v1029_v57  ;;  %vm1035_vm3 = vweird.f32 %v1029_v57  ;;  %v1019_v28 = vmul.f32 %v1018_v17, %v1871_v20 }
 0x8aa   : > { %v1067_v4 = vadd.f32 0.4994258, %v1066_v63  ;;  %v1056_v14 = vadd.f32 0.18741608, %v1055_v7  ;;  %v1042_v22 = vor.u32 1.1754944e-38, %v1041_v13 }
 0x8ab   : > { %vm1040_vm5 = vcmp.eq.f32.partialorder %v1039_v15, 8.507059e+37 }
 0x8ac   : > { %v1068_v5 = vmul.f32 %v1067_v4, %v1048_v37  ;;  %v1057_v24 = vmul.f32 %v1056_v14, %v1048_v37 }
 0x8ae   : > { %v1500_v10 = vpop.eup %1499  ;;  %v1069_v8 = vadd.f32 1.0, %v1068_v5  ;;  %v1058_v23 = vadd.f32 1.1283791, %v1057_v24 }
 0x8af   : > { %v1031_v62 = vmul.f32 %v1500_v10, %v1029_v57  ;;  %vm1036_vm2 = vweird.f32 %v1500_v10 }
 0x8b0   : > { %1501 = vrcp.f32 %v1069_v8  ;;  %vm1037_vm4 = vmor %vm1035_vm3, %vm1036_vm2  ;;  %v1081_v30 = vand.u32 2147483648, %v1069_v8  ;;  %v1079_v33 = vand.u32 2147483647, %v1069_v8  ;;  %vm1075_vm7 = vweird.f32 %v1069_v8 }
 0x8b1   : > { %v1032_v9 = vsub.f32 1.0, %v1031_v62  ;;  %v1059_v37 = vmul.f32 %v1058_v23, %v1884_v31  ;;  %v1456_v31 = vld [vmem:[%s1958_s11] ss:$0 sm:$0xff] }
 0x8b2   : > { %v1082_v36 = vor.u32 1.1754944e-38, %v1081_v30  ;;  %vm1080_vm9 = vcmp.eq.f32.partialorder %v1079_v33, 8.507059e+37 }
 0x8b3   : > { %v1033_v12 = vmul.f32 %v1500_v10, %v1032_v9 }
 0x8b5   : > { %v1034_v16 = vadd.f32 %v1500_v10, %v1033_v12 }
 0x8b6   : > { %v1502_v19 = vpop.eup %1501 }
 0x8b7   : > { %v1038_v21 = vsel %vm1037_vm4, %v1500_v10, %v1034_v16  ;;  %v1071_v25 = vmul.f32 %v1502_v19, %v1069_v8  ;;  %vm1076_vm6 = vweird.f32 %v1502_v19 }
 0x8b8   : > { %v1043_v26 = vsel %vm1040_vm5, %v1042_v22, %v1038_v21  ;;  %vm1077_vm8 = vmor %vm1075_vm7, %vm1076_vm6 }
 0x8b9   : > { %v1072_v29 = vsub.f32 1.0, %v1071_v25  ;;  %v1044_v43 = vmul.f32 %v1043_v26, %v1019_v28 }
 0x8bb   : > { %v1073_v42 = vmul.f32 %v1502_v19, %v1072_v29  ;;  %v1314_v38 = vclamps-f32 %v1044_v43, 1.0 }
 0x8bd   : > { %v1074_v34 = vadd.f32 %v1502_v19, %v1073_v42  ;;  %v1087_v40 = vadd.f32 1.0, %v1314_v38 }
 0x8bf   : > { %v1078_v0 = vsel %vm1077_vm8, %v1502_v19, %v1074_v34  ;;  %v1089_v45 = vmul.f32 %v1087_v40, %v1003_v41 }
 0x8c0   : > { %v1083_v39 = vsel %vm1080_vm9, %v1082_v36, %v1078_v0 }
 0x8c1   : > { %v1084_v20 = vmul.f32 %v1083_v39, %v1059_v37 }
 0x8c3   : > { %v1315_v58 = vclamps-f32 %v1084_v20, 1.0 }
 0x8c5   : > { %v1088_v44 = vadd.f32 1.0, %v1315_v58 }
 0x8c7   : > { %v1090_v46 = vmul.f32 %v1088_v44, %v1004_v2 }
 0x8c9   : > { %v1107_v47 = vpack.c.bf16 %v1090_v46, %v1089_v45 }
 0x8cb   : > { %1164 = vmatmul.bf16.vlgmr.msrb.gmra.mxu3 %v1107_v47 }
 0x94e   : > { %v1165_v48 = vpop.f32.mrf.mxu3 }
 0x94f   : > { %v1170_v49 = vadd.f32 %v1165_v48, %v1832_v32 }
 0x951   : > { %v1176_v50 = vadd.f32 %v1456_v31, %v1170_v49 }
 0x953   : > { %1178 = vst.msk [vmem:[%s421_s29] sm:$0xff] %vm430_vm0, %v1176_v50 }
 0x956   : > { %v1167_v18 = vpop.f32.mrf.mxu3 }
 0x957   : > { %v1171_v27 = vadd.f32 %v1167_v18, %v1837_v35 }
 0x959   : > { %v1177_v51 = vadd.f32 %v1456_v31, %v1171_v27 }
 0x95b   : > { %1179 = vst.msk [vmem:[%s421_s29 + $0x8] sm:$0xff] %vm430_vm0, %v1177_v51 }
 0x95c   : > { %1560 = shalt.err (!%p1557_p8)
}
 0x95d   : > { %s1617_s18 = smov 128   ;;  %s1967_s29 = smov 8  }
 0x95e   : > { %1373 = dma.vmem_to_hbm [thread:$0]  (%p1721_p5), %s1194_s0, 256, %s1196_s1, %s1181_s25, %s1617_s18, %s1617_s18, %s1967_s29  }
 0x95f PF: > { %p1385_p9 = scmp.ge.s32.totalorder %s1599_s24, 2  ;;  %s1210_s26 = sand.u32 1, %s1587_s21  }
 0x960   : > { %s1211_s28 = scalar_lea.sflag [#allocation4], %s1210_s26 }
 0x961   : > { %p1380_p10 = pnand %p1385_p9, %p1725_p6 }
 0x963   : > { %p1381_p11 = pneg %p1380_p10 }
 0x965   : > { %1582 = dma.done.wait (%p1381_p11), %s1211_s28, 256  }
 0x966   : > { %1584 = vsyncadd (%p1381_p11), %s1211_s28, 4294967040  ;;  %p23_p12 = scmp.ge.s32.totalorder %s1708_s27, 4   ;;  %s1968_s21 = smov %s1591_s22 }
 0x967   : > { %s1969_s22 = smov %s1595_s23  ;;  %s1970_s23 = smov %s1719_s30 }
 0x968   : > { %s1971_s24 = smov %s1708_s27  ;;  %25 = sbr.rel (!%p23_p12) target bundleno = 7 (0x7), region = 108 }
 0x96d   :  { %1217 = vsyncpa [#allocation3], 1 }
 0x96e   :  { %1219 = vsyncpa [#allocation3 + $0x1], 1 }
 0x96f   :  { %1220 = vsyncpa [#allocation4], 1 }
 0x970   :  { %1222 = vsyncpa [#allocation4 + $0x1], 1 }

</bundles_post_ra>
